<compile_context>
chip_gen: v5e
topology: v5e:2x2
jax: 0.10.0
libtpu: 0.0.40
codegen_flags: <defaults>
</compile_context>

<pallas_src>
import jax
import jax.numpy as jnp
from jax import lax
from jax.experimental import pallas as pl
from jax.experimental.pallas import tpu as pltpu


_BLOCK_N = 128  # max batch-tile rows per grid step


def _round_up(v, m):
    return (v + m - 1) // m * m


# --------------------------- weight re-packing (XLA) --------------------------- #

def _conv1_matrix(w):
    """(7,1,5,5) torch conv1 weight -> (140, 168) strip-matmul matrix.

    Row    index = i*28 + wi           (kernel row i, input column wi)
    Column index = s*84 + q*7 + c      (conv output column ow = 2*q + s, channel c)
    """
    w = w.reshape(7, 5, 5)
    i = jnp.arange(5)[:, None, None, None, None]
    wi = jnp.arange(28)[None, :, None, None, None]
    s = jnp.arange(2)[None, None, :, None, None]
    q = jnp.arange(12)[None, None, None, :, None]
    c = jnp.arange(7)[None, None, None, None, :]
    j = wi - (2 * q + s)
    vals = jnp.where((j >= 0) & (j < 5), w[c, i, jnp.clip(j, 0, 4)], 0.0)
    return vals.reshape(140, 168)


def _conv2_matrix(w):
    """(14,7,3,3) torch conv2 weight -> (3, 84, 140).

    [i] = kernel row; row index = w1*7 + cin (pooled conv1 column w1, in-channel);
    column index = s*70 + q*14 + cout (conv2 output column ow2 = 2*q + s).
    """
    i = jnp.arange(3)[:, None, None, None, None, None]
    w1 = jnp.arange(12)[None, :, None, None, None, None]
    ci = jnp.arange(7)[None, None, :, None, None, None]
    s = jnp.arange(2)[None, None, None, :, None, None]
    q = jnp.arange(5)[None, None, None, None, :, None]
    co = jnp.arange(14)[None, None, None, None, None, :]
    j = w1 - (2 * q + s)
    vals = jnp.where((j >= 0) & (j < 3), w[co, ci, i, jnp.clip(j, 0, 2)], 0.0)
    return vals.reshape(3, 84, 140)


def _fc1_matrix(w):
    """(120, 350) torch fc1 weight -> (5, 70, 120) matching the kernel's
    (pooled_row r, col q*14 + chan c) activation layout (torch flatten order is
    c*25 + r*5 + q)."""
    w = w.reshape(120, 14, 5, 5)          # (out, chan, row, col)
    w = jnp.transpose(w, (2, 3, 1, 0))    # (row, col, chan, out)
    return w.reshape(5, 70, 120)


# --------------------------------- the kernel --------------------------------- #

def _convnet_kernel(x_ref, wc1_ref, bc1_ref, wc2_ref, bc2_ref,
                    wf1_ref, bf1_ref, wf2_ref, bf2_ref, out_ref):
    f32 = jnp.float32
    bf16 = jnp.bfloat16
    tb = x_ref.shape[0]

    # ---- conv1 (1->7, 5x5) + 2x2/2 max-pool + ReLU ----
    # Strip im2col in VMEM: conv output row `oh` needs input rows oh..oh+4, i.e.
    # lanes [oh*28, oh*28+140) of the flattened image.
    x32 = x_ref[...]                                                     # (tb, 784)
    strips = jnp.concatenate(
        [x32[:, oh * 28: oh * 28 + 140] for oh in range(24)], axis=0)    # (24*tb, 140)
    z1 = jnp.dot(strips.astype(bf16), wc1_ref[...],
                 preferred_element_type=f32)                             # (24*tb, 168)
    z1 = z1.reshape(12, 2, tb, 168)
    z1 = jnp.maximum(z1[:, 0], z1[:, 1])              # pool over output rows (12, tb, 168)
    z1 = jnp.maximum(z1[:, :, :84], z1[:, :, 84:])    # pool over output cols (12, tb, 84)
    a1 = jnp.maximum(z1 + bc1_ref[...], 0.0)          # bias + ReLU (post-pool is exact)

    # ---- conv2 (7->14, 3x3) + 2x2/2 max-pool + ReLU ----
    # Sum over the 3 kernel rows: LHS_i = pooled rows [i, i+10), one matmul each.
    z2 = jnp.dot(a1[0:10].reshape(10 * tb, 84).astype(bf16), wc2_ref[0],
                 preferred_element_type=f32)
    z2 = z2 + jnp.dot(a1[1:11].reshape(10 * tb, 84).astype(bf16), wc2_ref[1],
                      preferred_element_type=f32)
    z2 = z2 + jnp.dot(a1[2:12].reshape(10 * tb, 84).astype(bf16), wc2_ref[2],
                      preferred_element_type=f32)                        # (10*tb, 140)
    z2 = z2.reshape(5, 2, tb, 140)
    z2 = jnp.maximum(z2[:, 0], z2[:, 1])              # (5, tb, 140)
    z2 = jnp.maximum(z2[:, :, :70], z2[:, :, 70:])    # (5, tb, 70)
    a2 = jnp.maximum(z2 + bc2_ref[...], 0.0)

    # ---- fc1 (350->120) + ReLU (weights pre-permuted to this layout) ----
    h = jnp.dot(a2[0].astype(bf16), wf1_ref[0], preferred_element_type=f32)
    for r in range(1, 5):
        h = h + jnp.dot(a2[r].astype(bf16), wf1_ref[r], preferred_element_type=f32)
    h = jnp.maximum(h + bf1_ref[...], 0.0)                               # (tb, 120)

    # ---- fc2 (120->36) + log_softmax(dim=1) ----
    logits = jnp.dot(h.astype(bf16), wf2_ref[...],
                     preferred_element_type=f32) + bf2_ref[...]          # (tb, 36)
    m = jnp.max(logits, axis=1, keepdims=True)
    s = logits - m
    lse = jnp.log(jnp.sum(jnp.exp(s), axis=1, keepdims=True))
    out_ref[...] = (s - lse).astype(out_ref.dtype)


# --------------------------------- JAX wrapper --------------------------------- #

@jax.jit
def convnet_forward(x_nchw, params):
    n = x_nchw.shape[0]
    x2 = x_nchw.reshape(n, 28 * 28).astype(jnp.float32)

    tb = min(_BLOCK_N, _round_up(n, 8))
    n_pad = _round_up(n, tb)
    if n_pad != n:
        x2 = jnp.pad(x2, ((0, n_pad - n), (0, 0)))
    grid = (n_pad // tb,)

    bf16 = jnp.bfloat16
    wc1 = _conv1_matrix(params["conv1_w"]).astype(bf16)        # (140, 168)
    bc1 = jnp.tile(params["conv1_b"], 12).reshape(1, 84)       # bias per (q, c), f32
    wc2 = _conv2_matrix(params["conv2_w"]).astype(bf16)        # (3, 84, 140)
    bc2 = jnp.tile(params["conv2_b"], 5).reshape(1, 70)
    wf1 = _fc1_matrix(params["fc1_w"]).astype(bf16)            # (5, 70, 120)
    bf1 = params["fc1_b"].reshape(1, 120)
    wf2 = params["fc2_w"].T.astype(bf16)                       # (120, 36)
    bf2 = params["fc2_b"].reshape(1, 36)

    flops_per_img = 2 * (24 * 140 * 168 + 10 * 252 * 140 + 350 * 120 + 120 * 36)
    weight_bytes = (2 * (140 * 168 + 3 * 84 * 140 + 5 * 70 * 120 + 120 * 36)
                    + 4 * (84 + 70 + 120 + 36))
    cost = pl.CostEstimate(
        flops=flops_per_img * n_pad,
        transcendentals=37 * n_pad,
        bytes_accessed=n_pad * (784 + 36) * 4 + weight_bytes,
    )

    out = pl.pallas_call(
        _convnet_kernel,
        out_shape=jax.ShapeDtypeStruct((n_pad, 36), jnp.float32),
        grid=grid,
        in_specs=[
            pl.BlockSpec((tb, 784), lambda i: (i, 0)),        # image tile (pipelined)
            pl.BlockSpec((140, 168), lambda i: (0, 0)),       # weights: constant index ->
            pl.BlockSpec((1, 84), lambda i: (0, 0)),          #   DMA'd once, VMEM-resident
            pl.BlockSpec((3, 84, 140), lambda i: (0, 0, 0)),
            pl.BlockSpec((1, 70), lambda i: (0, 0)),
            pl.BlockSpec((5, 70, 120), lambda i: (0, 0, 0)),
            pl.BlockSpec((1, 120), lambda i: (0, 0)),
            pl.BlockSpec((120, 36), lambda i: (0, 0)),
            pl.BlockSpec((1, 36), lambda i: (0, 0)),
        ],
        out_specs=pl.BlockSpec((tb, 36), lambda i: (i, 0)),
        compiler_params=pltpu.CompilerParams(
            dimension_semantics=("parallel",),
            vmem_limit_bytes=32 * 1024 * 1024,
        ),
        cost_estimate=cost,
    )(x2, wc1, bc1, wc2, bc2, wf1, bf1, wf2, bf2)
    return out[:n]                                             # (N, 36) log-probs


def init_params(key):
    ks = jax.random.split(key, 8)

    def uni(k, shape, fan_in):
        bound = 1.0 / jnp.sqrt(float(fan_in))
        return jax.random.uniform(k, shape, jnp.float32, -bound, bound)

    return {
        "conv1_w": uni(ks[0], (7, 1, 5, 5), 1 * 5 * 5),
        "conv1_b": uni(ks[1], (7,), 1 * 5 * 5),
        "conv2_w": uni(ks[2], (14, 7, 3, 3), 7 * 3 * 3),
        "conv2_b": uni(ks[3], (14,), 7 * 3 * 3),
        "fc1_w": uni(ks[4], (120, 14 * 5 * 5), 14 * 5 * 5),
        "fc1_b": uni(ks[5], (120,), 14 * 5 * 5),
        "fc2_w": uni(ks[6], (36, 120), 120),
        "fc2_b": uni(ks[7], (36,), 120),
    }


def _reference_forward(x, params):
    """Pure-XLA f32 reference matching the PyTorch module."""
    dn = ("NCHW", "OIHW", "NCHW")
    z = lax.conv_general_dilated(x, params["conv1_w"], (1, 1), "VALID",
                                 dimension_numbers=dn)
    z = jnp.maximum(z + params["conv1_b"][None, :, None, None], 0.0)
    z = lax.reduce_window(z, -jnp.inf, lax.max, (1, 1, 2, 2), (1, 1, 2, 2), "VALID")
    z = lax.conv_general_dilated(z, params["conv2_w"], (1, 1), "VALID",
                                 dimension_numbers=dn)
    z = jnp.maximum(z + params["conv2_b"][None, :, None, None], 0.0)
    z = lax.reduce_window(z, -jnp.inf, lax.max, (1, 1, 2, 2), (1, 1, 2, 2), "VALID")
    z = z.reshape(x.shape[0], -1)
    z = jnp.maximum(z @ params["fc1_w"].T + params["fc1_b"], 0.0)
    z = z @ params["fc2_w"].T + params["fc2_b"]
    return jax.nn.log_softmax(z, axis=1)


if __name__ == "__main__":
    key = jax.random.PRNGKey(0)
    kx, kp = jax.random.split(key)
    # 28x28 single-channel input is what fc1's 14*5*5 input features require.
    x = jax.random.normal(kx, (2, 1, 28, 28), jnp.float32)
    params = init_params(kp)

    out = jax.block_until_ready(convnet_forward(x, params))

    assert out.shape == (2, 36)
    assert bool(jnp.all(jnp.isfinite(out)))
    # log_softmax rows must exponentiate-sum to 1
    assert bool(jnp.allclose(jnp.sum(jnp.exp(out), axis=1), 1.0, atol=1e-4))
    # loose tolerance: kernel matmuls run in bf16 with f32 accumulation
    ref = _reference_forward(x, params)
    err = float(jnp.max(jnp.abs(out - ref)))
    assert err < 0.1, f"mismatch vs XLA reference: {err}"
    print("KERNEL_OK")
</pallas_src>

<mosaic_0001>
module attributes {stable_mosaic.version = 11 : i64} {
  func.func @_convnet_kernel(%arg0: i32, %arg1: memref<8x784xf32, #tpu.memory_space<vmem>>, %arg2: memref<140x168xbf16, #tpu.memory_space<vmem>>, %arg3: memref<1x84xf32, #tpu.memory_space<vmem>>, %arg4: memref<3x84x140xbf16, #tpu.memory_space<vmem>>, %arg5: memref<1x70xf32, #tpu.memory_space<vmem>>, %arg6: memref<5x70x120xbf16, #tpu.memory_space<vmem>>, %arg7: memref<1x120xf32, #tpu.memory_space<vmem>>, %arg8: memref<120x36xbf16, #tpu.memory_space<vmem>>, %arg9: memref<1x36xf32, #tpu.memory_space<vmem>>, %arg10: memref<8x36xf32, #tpu.memory_space<vmem>>) attributes {dimension_semantics = [#tpu.dimension_semantics<parallel>], iteration_bounds = array<i64: 1>, scalar_prefetch = 0 : i64, scratch_operands = 0 : i64, tpu.core_type = #tpu.core_type<tc>, window_params = [{transform_indices = @transform_0, window_bounds = array<i64: 8, 784>}, {pipeline_mode = #tpu.pipeline_mode<synchronous>, transform_indices = @transform_1, window_bounds = array<i64: 140, 168>}, {pipeline_mode = #tpu.pipeline_mode<synchronous>, transform_indices = @transform_2, window_bounds = array<i64: 1, 84>}, {pipeline_mode = #tpu.pipeline_mode<synchronous>, transform_indices = @transform_3, window_bounds = array<i64: 3, 84, 140>}, {pipeline_mode = #tpu.pipeline_mode<synchronous>, transform_indices = @transform_4, window_bounds = array<i64: 1, 70>}, {pipeline_mode = #tpu.pipeline_mode<synchronous>, transform_indices = @transform_5, window_bounds = array<i64: 5, 70, 120>}, {pipeline_mode = #tpu.pipeline_mode<synchronous>, transform_indices = @transform_6, window_bounds = array<i64: 1, 120>}, {pipeline_mode = #tpu.pipeline_mode<synchronous>, transform_indices = @transform_7, window_bounds = array<i64: 120, 36>}, {pipeline_mode = #tpu.pipeline_mode<synchronous>, transform_indices = @transform_8, window_bounds = array<i64: 1, 36>}, {transform_indices = @transform_9, window_bounds = array<i64: 8, 36>}]} {
    %c0 = arith.constant 0 : index
    %c0_0 = arith.constant 0 : index
    %0 = vector.load %arg1[%c0, %c0_0] : memref<8x784xf32, #tpu.memory_space<vmem>>, vector<8x784xf32>
    %1 = vector.extract_strided_slice %0 {offsets = [0, 0], sizes = [8, 140], strides = [1, 1]} : vector<8x784xf32> to vector<8x140xf32>
    %2 = vector.extract_strided_slice %0 {offsets = [0, 28], sizes = [8, 140], strides = [1, 1]} : vector<8x784xf32> to vector<8x140xf32>
    %3 = vector.extract_strided_slice %0 {offsets = [0, 56], sizes = [8, 140], strides = [1, 1]} : vector<8x784xf32> to vector<8x140xf32>
    %4 = vector.extract_strided_slice %0 {offsets = [0, 84], sizes = [8, 140], strides = [1, 1]} : vector<8x784xf32> to vector<8x140xf32>
    %5 = vector.extract_strided_slice %0 {offsets = [0, 112], sizes = [8, 140], strides = [1, 1]} : vector<8x784xf32> to vector<8x140xf32>
    %6 = vector.extract_strided_slice %0 {offsets = [0, 140], sizes = [8, 140], strides = [1, 1]} : vector<8x784xf32> to vector<8x140xf32>
    %7 = vector.extract_strided_slice %0 {offsets = [0, 168], sizes = [8, 140], strides = [1, 1]} : vector<8x784xf32> to vector<8x140xf32>
    %8 = vector.extract_strided_slice %0 {offsets = [0, 196], sizes = [8, 140], strides = [1, 1]} : vector<8x784xf32> to vector<8x140xf32>
    %9 = vector.extract_strided_slice %0 {offsets = [0, 224], sizes = [8, 140], strides = [1, 1]} : vector<8x784xf32> to vector<8x140xf32>
    %10 = vector.extract_strided_slice %0 {offsets = [0, 252], sizes = [8, 140], strides = [1, 1]} : vector<8x784xf32> to vector<8x140xf32>
    %11 = vector.extract_strided_slice %0 {offsets = [0, 280], sizes = [8, 140], strides = [1, 1]} : vector<8x784xf32> to vector<8x140xf32>
    %12 = vector.extract_strided_slice %0 {offsets = [0, 308], sizes = [8, 140], strides = [1, 1]} : vector<8x784xf32> to vector<8x140xf32>
    %13 = vector.extract_strided_slice %0 {offsets = [0, 336], sizes = [8, 140], strides = [1, 1]} : vector<8x784xf32> to vector<8x140xf32>
    %14 = vector.extract_strided_slice %0 {offsets = [0, 364], sizes = [8, 140], strides = [1, 1]} : vector<8x784xf32> to vector<8x140xf32>
    %15 = vector.extract_strided_slice %0 {offsets = [0, 392], sizes = [8, 140], strides = [1, 1]} : vector<8x784xf32> to vector<8x140xf32>
    %16 = vector.extract_strided_slice %0 {offsets = [0, 420], sizes = [8, 140], strides = [1, 1]} : vector<8x784xf32> to vector<8x140xf32>
    %17 = vector.extract_strided_slice %0 {offsets = [0, 448], sizes = [8, 140], strides = [1, 1]} : vector<8x784xf32> to vector<8x140xf32>
    %18 = vector.extract_strided_slice %0 {offsets = [0, 476], sizes = [8, 140], strides = [1, 1]} : vector<8x784xf32> to vector<8x140xf32>
    %19 = vector.extract_strided_slice %0 {offsets = [0, 504], sizes = [8, 140], strides = [1, 1]} : vector<8x784xf32> to vector<8x140xf32>
    %20 = vector.extract_strided_slice %0 {offsets = [0, 532], sizes = [8, 140], strides = [1, 1]} : vector<8x784xf32> to vector<8x140xf32>
    %21 = vector.extract_strided_slice %0 {offsets = [0, 560], sizes = [8, 140], strides = [1, 1]} : vector<8x784xf32> to vector<8x140xf32>
    %22 = vector.extract_strided_slice %0 {offsets = [0, 588], sizes = [8, 140], strides = [1, 1]} : vector<8x784xf32> to vector<8x140xf32>
    %23 = vector.extract_strided_slice %0 {offsets = [0, 616], sizes = [8, 140], strides = [1, 1]} : vector<8x784xf32> to vector<8x140xf32>
    %24 = vector.extract_strided_slice %0 {offsets = [0, 644], sizes = [8, 140], strides = [1, 1]} : vector<8x784xf32> to vector<8x140xf32>
    %25 = tpu.concatenate %1, %2, %3, %4, %5, %6, %7, %8, %9, %10, %11, %12, %13, %14, %15, %16 in 0 : vector<8x140xf32>, vector<8x140xf32>, vector<8x140xf32>, vector<8x140xf32>, vector<8x140xf32>, vector<8x140xf32>, vector<8x140xf32>, vector<8x140xf32>, vector<8x140xf32>, vector<8x140xf32>, vector<8x140xf32>, vector<8x140xf32>, vector<8x140xf32>, vector<8x140xf32>, vector<8x140xf32>, vector<8x140xf32> -> vector<128x140xf32>
    %26 = tpu.concatenate %17, %18, %19, %20, %21, %22, %23, %24 in 0 : vector<8x140xf32>, vector<8x140xf32>, vector<8x140xf32>, vector<8x140xf32>, vector<8x140xf32>, vector<8x140xf32>, vector<8x140xf32>, vector<8x140xf32> -> vector<64x140xf32>
    %27 = tpu.concatenate %25, %26 in 0 : vector<128x140xf32>, vector<64x140xf32> -> vector<192x140xf32>
    %28 = arith.truncf %27 : vector<192x140xf32> to vector<192x140xbf16>
    %c0_1 = arith.constant 0 : index
    %c0_2 = arith.constant 0 : index
    %29 = vector.load %arg2[%c0_1, %c0_2] : memref<140x168xbf16, #tpu.memory_space<vmem>>, vector<140x168xbf16>
    %cst = arith.constant dense<0.000000e+00> : vector<192x168xf32>
    %30 = tpu.matmul %28, %29, %cst {dimension_numbers = #tpu.dot_dimension_numbers<[1], [0], [0], [1], [0, 0, 1, 1], [], []>} : vector<192x140xbf16>, vector<140x168xbf16>, vector<192x168xf32> -> vector<192x168xf32>
    %31 = vector.shape_cast %30 : vector<192x168xf32> to vector<12x2x8x168xf32>
    %32 = vector.extract_strided_slice %31 {offsets = [0, 0, 0, 0], sizes = [12, 1, 8, 168], strides = [1, 1, 1, 1]} : vector<12x2x8x168xf32> to vector<12x1x8x168xf32>
    %33 = vector.shape_cast %32 : vector<12x1x8x168xf32> to vector<12x8x168xf32>
    %34 = vector.extract_strided_slice %31 {offsets = [0, 1, 0, 0], sizes = [12, 1, 8, 168], strides = [1, 1, 1, 1]} : vector<12x2x8x168xf32> to vector<12x1x8x168xf32>
    %35 = vector.shape_cast %34 : vector<12x1x8x168xf32> to vector<12x8x168xf32>
    %36 = arith.maximumf %33, %35 : vector<12x8x168xf32>
    %37 = vector.extract_strided_slice %36 {offsets = [0, 0, 0], sizes = [12, 8, 84], strides = [1, 1, 1]} : vector<12x8x168xf32> to vector<12x8x84xf32>
    %38 = vector.extract_strided_slice %36 {offsets = [0, 0, 84], sizes = [12, 8, 84], strides = [1, 1, 1]} : vector<12x8x168xf32> to vector<12x8x84xf32>
    %39 = arith.maximumf %37, %38 : vector<12x8x84xf32>
    %c0_3 = arith.constant 0 : index
    %c0_4 = arith.constant 0 : index
    %40 = vector.load %arg3[%c0_3, %c0_4] : memref<1x84xf32, #tpu.memory_space<vmem>>, vector<1x84xf32>
    %41 = vector.shape_cast %40 : vector<1x84xf32> to vector<1x1x84xf32>
    %42 = vector.broadcast %41 : vector<1x1x84xf32> to vector<12x8x84xf32>
    %43 = arith.addf %39, %42 : vector<12x8x84xf32>
    %cst_5 = arith.constant 0.000000e+00 : f32
    %44 = vector.broadcast %cst_5 : f32 to vector<12x8x84xf32>
    %45 = arith.maximumf %43, %44 : vector<12x8x84xf32>
    %46 = vector.extract_strided_slice %45 {offsets = [0, 0, 0], sizes = [10, 8, 84], strides = [1, 1, 1]} : vector<12x8x84xf32> to vector<10x8x84xf32>
    %47 = vector.shape_cast %46 : vector<10x8x84xf32> to vector<80x84xf32>
    %48 = arith.truncf %47 : vector<80x84xf32> to vector<80x84xbf16>
    %c0_6 = arith.constant 0 : index
    %c0_7 = arith.constant 0 : index
    %c0_8 = arith.constant 0 : index
    %49 = vector.load %arg4[%c0_6, %c0_7, %c0_8] : memref<3x84x140xbf16, #tpu.memory_space<vmem>>, vector<1x84x140xbf16>
    %50 = vector.shape_cast %49 : vector<1x84x140xbf16> to vector<84x140xbf16>
    %cst_9 = arith.constant dense<0.000000e+00> : vector<80x140xf32>
    %51 = tpu.matmul %48, %50, %cst_9 {dimension_numbers = #tpu.dot_dimension_numbers<[1], [0], [0], [1], [0, 0, 1, 1], [], []>} : vector<80x84xbf16>, vector<84x140xbf16>, vector<80x140xf32> -> vector<80x140xf32>
    %52 = vector.extract_strided_slice %45 {offsets = [1, 0, 0], sizes = [10, 8, 84], strides = [1, 1, 1]} : vector<12x8x84xf32> to vector<10x8x84xf32>
    %53 = vector.shape_cast %52 : vector<10x8x84xf32> to vector<80x84xf32>
    %54 = arith.truncf %53 : vector<80x84xf32> to vector<80x84xbf16>
    %c1 = arith.constant 1 : index
    %c0_10 = arith.constant 0 : index
    %c0_11 = arith.constant 0 : index
    %55 = vector.load %arg4[%c1, %c0_10, %c0_11] : memref<3x84x140xbf16, #tpu.memory_space<vmem>>, vector<1x84x140xbf16>
    %56 = vector.shape_cast %55 : vector<1x84x140xbf16> to vector<84x140xbf16>
    %cst_12 = arith.constant dense<0.000000e+00> : vector<80x140xf32>
    %57 = tpu.matmul %54, %56, %cst_12 {dimension_numbers = #tpu.dot_dimension_numbers<[1], [0], [0], [1], [0, 0, 1, 1], [], []>} : vector<80x84xbf16>, vector<84x140xbf16>, vector<80x140xf32> -> vector<80x140xf32>
    %58 = arith.addf %51, %57 : vector<80x140xf32>
    %59 = vector.extract_strided_slice %45 {offsets = [2, 0, 0], sizes = [10, 8, 84], strides = [1, 1, 1]} : vector<12x8x84xf32> to vector<10x8x84xf32>
    %60 = vector.shape_cast %59 : vector<10x8x84xf32> to vector<80x84xf32>
    %61 = arith.truncf %60 : vector<80x84xf32> to vector<80x84xbf16>
    %c2 = arith.constant 2 : index
    %c0_13 = arith.constant 0 : index
    %c0_14 = arith.constant 0 : index
    %62 = vector.load %arg4[%c2, %c0_13, %c0_14] : memref<3x84x140xbf16, #tpu.memory_space<vmem>>, vector<1x84x140xbf16>
    %63 = vector.shape_cast %62 : vector<1x84x140xbf16> to vector<84x140xbf16>
    %cst_15 = arith.constant dense<0.000000e+00> : vector<80x140xf32>
    %64 = tpu.matmul %61, %63, %cst_15 {dimension_numbers = #tpu.dot_dimension_numbers<[1], [0], [0], [1], [0, 0, 1, 1], [], []>} : vector<80x84xbf16>, vector<84x140xbf16>, vector<80x140xf32> -> vector<80x140xf32>
    %65 = arith.addf %58, %64 : vector<80x140xf32>
    %66 = vector.shape_cast %65 : vector<80x140xf32> to vector<5x2x8x140xf32>
    %67 = vector.extract_strided_slice %66 {offsets = [0, 0, 0, 0], sizes = [5, 1, 8, 140], strides = [1, 1, 1, 1]} : vector<5x2x8x140xf32> to vector<5x1x8x140xf32>
    %68 = vector.shape_cast %67 : vector<5x1x8x140xf32> to vector<5x8x140xf32>
    %69 = vector.extract_strided_slice %66 {offsets = [0, 1, 0, 0], sizes = [5, 1, 8, 140], strides = [1, 1, 1, 1]} : vector<5x2x8x140xf32> to vector<5x1x8x140xf32>
    %70 = vector.shape_cast %69 : vector<5x1x8x140xf32> to vector<5x8x140xf32>
    %71 = arith.maximumf %68, %70 : vector<5x8x140xf32>
    %72 = vector.extract_strided_slice %71 {offsets = [0, 0, 0], sizes = [5, 8, 70], strides = [1, 1, 1]} : vector<5x8x140xf32> to vector<5x8x70xf32>
    %73 = vector.extract_strided_slice %71 {offsets = [0, 0, 70], sizes = [5, 8, 70], strides = [1, 1, 1]} : vector<5x8x140xf32> to vector<5x8x70xf32>
    %74 = arith.maximumf %72, %73 : vector<5x8x70xf32>
    %c0_16 = arith.constant 0 : index
    %c0_17 = arith.constant 0 : index
    %75 = vector.load %arg5[%c0_16, %c0_17] : memref<1x70xf32, #tpu.memory_space<vmem>>, vector<1x70xf32>
    %76 = vector.shape_cast %75 : vector<1x70xf32> to vector<1x1x70xf32>
    %77 = vector.broadcast %76 : vector<1x1x70xf32> to vector<5x8x70xf32>
    %78 = arith.addf %74, %77 : vector<5x8x70xf32>
    %cst_18 = arith.constant 0.000000e+00 : f32
    %79 = vector.broadcast %cst_18 : f32 to vector<5x8x70xf32>
    %80 = arith.maximumf %78, %79 : vector<5x8x70xf32>
    %81 = vector.extract_strided_slice %80 {offsets = [0, 0, 0], sizes = [1, 8, 70], strides = [1, 1, 1]} : vector<5x8x70xf32> to vector<1x8x70xf32>
    %82 = vector.shape_cast %81 : vector<1x8x70xf32> to vector<8x70xf32>
    %83 = arith.truncf %82 : vector<8x70xf32> to vector<8x70xbf16>
    %c0_19 = arith.constant 0 : index
    %c0_20 = arith.constant 0 : index
    %c0_21 = arith.constant 0 : index
    %84 = vector.load %arg6[%c0_19, %c0_20, %c0_21] : memref<5x70x120xbf16, #tpu.memory_space<vmem>>, vector<1x70x120xbf16>
    %85 = vector.shape_cast %84 : vector<1x70x120xbf16> to vector<70x120xbf16>
    %cst_22 = arith.constant dense<0.000000e+00> : vector<8x120xf32>
    %86 = tpu.matmul %83, %85, %cst_22 {dimension_numbers = #tpu.dot_dimension_numbers<[1], [0], [0], [1], [0, 0, 1, 1], [], []>} : vector<8x70xbf16>, vector<70x120xbf16>, vector<8x120xf32> -> vector<8x120xf32>
    %87 = vector.extract_strided_slice %80 {offsets = [1, 0, 0], sizes = [1, 8, 70], strides = [1, 1, 1]} : vector<5x8x70xf32> to vector<1x8x70xf32>
    %88 = vector.shape_cast %87 : vector<1x8x70xf32> to vector<8x70xf32>
    %89 = arith.truncf %88 : vector<8x70xf32> to vector<8x70xbf16>
    %c1_23 = arith.constant 1 : index
    %c0_24 = arith.constant 0 : index
    %c0_25 = arith.constant 0 : index
    %90 = vector.load %arg6[%c1_23, %c0_24, %c0_25] : memref<5x70x120xbf16, #tpu.memory_space<vmem>>, vector<1x70x120xbf16>
    %91 = vector.shape_cast %90 : vector<1x70x120xbf16> to vector<70x120xbf16>
    %cst_26 = arith.constant dense<0.000000e+00> : vector<8x120xf32>
    %92 = tpu.matmul %89, %91, %cst_26 {dimension_numbers = #tpu.dot_dimension_numbers<[1], [0], [0], [1], [0, 0, 1, 1], [], []>} : vector<8x70xbf16>, vector<70x120xbf16>, vector<8x120xf32> -> vector<8x120xf32>
    %93 = arith.addf %86, %92 : vector<8x120xf32>
    %94 = vector.extract_strided_slice %80 {offsets = [2, 0, 0], sizes = [1, 8, 70], strides = [1, 1, 1]} : vector<5x8x70xf32> to vector<1x8x70xf32>
    %95 = vector.shape_cast %94 : vector<1x8x70xf32> to vector<8x70xf32>
    %96 = arith.truncf %95 : vector<8x70xf32> to vector<8x70xbf16>
    %c2_27 = arith.constant 2 : index
    %c0_28 = arith.constant 0 : index
    %c0_29 = arith.constant 0 : index
    %97 = vector.load %arg6[%c2_27, %c0_28, %c0_29] : memref<5x70x120xbf16, #tpu.memory_space<vmem>>, vector<1x70x120xbf16>
    %98 = vector.shape_cast %97 : vector<1x70x120xbf16> to vector<70x120xbf16>
    %cst_30 = arith.constant dense<0.000000e+00> : vector<8x120xf32>
    %99 = tpu.matmul %96, %98, %cst_30 {dimension_numbers = #tpu.dot_dimension_numbers<[1], [0], [0], [1], [0, 0, 1, 1], [], []>} : vector<8x70xbf16>, vector<70x120xbf16>, vector<8x120xf32> -> vector<8x120xf32>
    %100 = arith.addf %93, %99 : vector<8x120xf32>
    %101 = vector.extract_strided_slice %80 {offsets = [3, 0, 0], sizes = [1, 8, 70], strides = [1, 1, 1]} : vector<5x8x70xf32> to vector<1x8x70xf32>
    %102 = vector.shape_cast %101 : vector<1x8x70xf32> to vector<8x70xf32>
    %103 = arith.truncf %102 : vector<8x70xf32> to vector<8x70xbf16>
    %c3 = arith.constant 3 : index
    %c0_31 = arith.constant 0 : index
    %c0_32 = arith.constant 0 : index
    %104 = vector.load %arg6[%c3, %c0_31, %c0_32] : memref<5x70x120xbf16, #tpu.memory_space<vmem>>, vector<1x70x120xbf16>
    %105 = vector.shape_cast %104 : vector<1x70x120xbf16> to vector<70x120xbf16>
    %cst_33 = arith.constant dense<0.000000e+00> : vector<8x120xf32>
    %106 = tpu.matmul %103, %105, %cst_33 {dimension_numbers = #tpu.dot_dimension_numbers<[1], [0], [0], [1], [0, 0, 1, 1], [], []>} : vector<8x70xbf16>, vector<70x120xbf16>, vector<8x120xf32> -> vector<8x120xf32>
    %107 = arith.addf %100, %106 : vector<8x120xf32>
    %108 = vector.extract_strided_slice %80 {offsets = [4, 0, 0], sizes = [1, 8, 70], strides = [1, 1, 1]} : vector<5x8x70xf32> to vector<1x8x70xf32>
    %109 = vector.shape_cast %108 : vector<1x8x70xf32> to vector<8x70xf32>
    %110 = arith.truncf %109 : vector<8x70xf32> to vector<8x70xbf16>
    %c4 = arith.constant 4 : index
    %c0_34 = arith.constant 0 : index
    %c0_35 = arith.constant 0 : index
    %111 = vector.load %arg6[%c4, %c0_34, %c0_35] : memref<5x70x120xbf16, #tpu.memory_space<vmem>>, vector<1x70x120xbf16>
    %112 = vector.shape_cast %111 : vector<1x70x120xbf16> to vector<70x120xbf16>
    %cst_36 = arith.constant dense<0.000000e+00> : vector<8x120xf32>
    %113 = tpu.matmul %110, %112, %cst_36 {dimension_numbers = #tpu.dot_dimension_numbers<[1], [0], [0], [1], [0, 0, 1, 1], [], []>} : vector<8x70xbf16>, vector<70x120xbf16>, vector<8x120xf32> -> vector<8x120xf32>
    %114 = arith.addf %107, %113 : vector<8x120xf32>
    %c0_37 = arith.constant 0 : index
    %c0_38 = arith.constant 0 : index
    %115 = vector.load %arg7[%c0_37, %c0_38] : memref<1x120xf32, #tpu.memory_space<vmem>>, vector<1x120xf32>
    %116 = vector.broadcast %115 : vector<1x120xf32> to vector<8x120xf32>
    %117 = arith.addf %114, %116 : vector<8x120xf32>
    %cst_39 = arith.constant 0.000000e+00 : f32
    %118 = vector.broadcast %cst_39 : f32 to vector<8x120xf32>
    %119 = arith.maximumf %117, %118 : vector<8x120xf32>
    %120 = arith.truncf %119 : vector<8x120xf32> to vector<8x120xbf16>
    %c0_40 = arith.constant 0 : index
    %c0_41 = arith.constant 0 : index
    %121 = vector.load %arg8[%c0_40, %c0_41] : memref<120x36xbf16, #tpu.memory_space<vmem>>, vector<120x36xbf16>
    %cst_42 = arith.constant dense<0.000000e+00> : vector<8x36xf32>
    %122 = tpu.matmul %120, %121, %cst_42 {dimension_numbers = #tpu.dot_dimension_numbers<[1], [0], [0], [1], [0, 0, 1, 1], [], []>} : vector<8x120xbf16>, vector<120x36xbf16>, vector<8x36xf32> -> vector<8x36xf32>
    %c0_43 = arith.constant 0 : index
    %c0_44 = arith.constant 0 : index
    %123 = vector.load %arg9[%c0_43, %c0_44] : memref<1x36xf32, #tpu.memory_space<vmem>>, vector<1x36xf32>
    %124 = vector.broadcast %123 : vector<1x36xf32> to vector<8x36xf32>
    %125 = arith.addf %122, %124 : vector<8x36xf32>
    %cst_45 = arith.constant dense<0xFF800000> : vector<8xf32>
    %126 = vector.multi_reduction <maximumf>, %125, %cst_45 [1] : vector<8x36xf32> to vector<8xf32>
    %127 = vector.shape_cast %126 : vector<8xf32> to vector<8x1xf32>
    %128 = vector.broadcast %127 : vector<8x1xf32> to vector<8x36xf32>
    %129 = arith.subf %125, %128 : vector<8x36xf32>
    %130 = math.exp %129 : vector<8x36xf32>
    %cst_46 = arith.constant dense<0.000000e+00> : vector<8xf32>
    %131 = vector.multi_reduction <add>, %130, %cst_46 [1] : vector<8x36xf32> to vector<8xf32>
    %132 = vector.shape_cast %131 : vector<8xf32> to vector<8x1xf32>
    %133 = math.log %132 : vector<8x1xf32>
    %134 = vector.broadcast %133 : vector<8x1xf32> to vector<8x36xf32>
    %135 = arith.subf %129, %134 : vector<8x36xf32>
    %c0_47 = arith.constant 0 : index
    %c0_48 = arith.constant 0 : index
    %136 = vector.load %arg10[%c0_47, %c0_48] : memref<8x36xf32, #tpu.memory_space<vmem>>, vector<8x36xf32>
    tpu.vector_store %arg10[%c0_47, %c0_48], %135 {strides = array<i32>} : memref<8x36xf32, #tpu.memory_space<vmem>>, vector<8x36xf32>,
    return
  }
  func.func @transform_0(%arg0: i32) -> (i32, i32) {
    %c0_i32 = arith.constant 0 : i32
    %c0_i32_0 = arith.constant 0 : i32
    return %arg0, %c0_i32 : i32, i32
  }
  func.func @transform_1(%arg0: i32) -> (i32, i32) {
    %c0_i32 = arith.constant 0 : i32
    %c0_i32_0 = arith.constant 0 : i32
    %c0_i32_1 = arith.constant 0 : i32
    return %c0_i32, %c0_i32_0 : i32, i32
  }
  func.func @transform_2(%arg0: i32) -> (i32, i32) {
    %c0_i32 = arith.constant 0 : i32
    %c0_i32_0 = arith.constant 0 : i32
    %c0_i32_1 = arith.constant 0 : i32
    return %c0_i32, %c0_i32_0 : i32, i32
  }
  func.func @transform_3(%arg0: i32) -> (i32, i32, i32) {
    %c0_i32 = arith.constant 0 : i32
    %c0_i32_0 = arith.constant 0 : i32
    %c0_i32_1 = arith.constant 0 : i32
    %c0_i32_2 = arith.constant 0 : i32
    return %c0_i32, %c0_i32_0, %c0_i32_1 : i32, i32, i32
  }
  func.func @transform_4(%arg0: i32) -> (i32, i32) {
    %c0_i32 = arith.constant 0 : i32
    %c0_i32_0 = arith.constant 0 : i32
    %c0_i32_1 = arith.constant 0 : i32
    return %c0_i32, %c0_i32_0 : i32, i32
  }
  func.func @transform_5(%arg0: i32) -> (i32, i32, i32) {
    %c0_i32 = arith.constant 0 : i32
    %c0_i32_0 = arith.constant 0 : i32
    %c0_i32_1 = arith.constant 0 : i32
    %c0_i32_2 = arith.constant 0 : i32
    return %c0_i32, %c0_i32_0, %c0_i32_1 : i32, i32, i32
  }
  func.func @transform_6(%arg0: i32) -> (i32, i32) {
    %c0_i32 = arith.constant 0 : i32
    %c0_i32_0 = arith.constant 0 : i32
    %c0_i32_1 = arith.constant 0 : i32
    return %c0_i32, %c0_i32_0 : i32, i32
  }
  func.func @transform_7(%arg0: i32) -> (i32, i32) {
    %c0_i32 = arith.constant 0 : i32
    %c0_i32_0 = arith.constant 0 : i32
    %c0_i32_1 = arith.constant 0 : i32
    return %c0_i32, %c0_i32_0 : i32, i32
  }
  func.func @transform_8(%arg0: i32) -> (i32, i32) {
    %c0_i32 = arith.constant 0 : i32
    %c0_i32_0 = arith.constant 0 : i32
    %c0_i32_1 = arith.constant 0 : i32
    return %c0_i32, %c0_i32_0 : i32, i32
  }
  func.func @transform_9(%arg0: i32) -> (i32, i32) {
    %c0_i32 = arith.constant 0 : i32
    %c0_i32_0 = arith.constant 0 : i32
    return %arg0, %c0_i32 : i32, i32
  }
}

</mosaic_0001>

<bundles_post_ra>
// kernel: tile.13
= control target key start
LH: loop header
LB: loop body
LE: loop exit
PB: predicated region body
PF: predicated region fallthrough
CT: control target
= control target key end

     0   :  { %s28_s0 = inlined_call_operand.vmem [shape: f32[7], index: 0, kind: input, shape index: {}]   ;;  %s29_s1 = inlined_call_operand.vmem [shape: f32[12,7], index: 1, kind: output, shape index: {}]  }
   0x1   :  { %v4_v0 = vld [vmem:[%s28_s0] ss:$0 sm:$0xff] }
   0x2   :  { %5 = vst [vmem:[%s29_s1] sm:$0xff] %v4_v0 }
   0x3   :  { %8 = vst [vmem:[%s29_s1 + $0x8] sm:$0xff] %v4_v0 }

// kernel: tile.14
= control target key start
LH: loop header
LB: loop body
LE: loop exit
PB: predicated region body
PF: predicated region fallthrough
CT: control target
= control target key end

     0   :  { %s99_s10 = smov 77   ;;  %s100_s11 = smov 63   ;;  %vm3_vm0 = vcmask 56320   ;;  %vm9_vm1 = vcmask 687720   ;;  %vm15_vm2 = vcmask 630320   ;;  %vm21_vm3 = vcmask 572920   ;;  %s159_s0 = inlined_call_operand.vmem [shape: f32[12,7], index: 0, kind: input, shape index: {}]   ;;  %s160_s1 = inlined_call_operand.vmem [shape: f32[1,84], index: 1, kind: output, shape index: {}]  }
   0x1   :  { %v77_v0 = vld [vmem:[%s159_s0 + $0xb] sm:$0x1]   ;;  %v79_v1 = vld [vmem:[%s159_s0 + $0x9] sm:$0x1]   ;;  %v81_v2 = vld [vmem:[%s159_s0 + $0x7] sm:$0x1]  }
   0x2   :  { %7 = vrot.lane.b32.xlu0 %v77_v0, %s99_s10  ;;  %19 = vrot.lane.b32.xlu1 %v79_v1, %s100_s11  ;;  %s101_s14 = smov 49   ;;  %v78_v3 = vld [vmem:[%s159_s0 + $0xa] sm:$0x1]   ;;  %v80_v4 = vld [vmem:[%s159_s0 + $0x8] sm:$0x1]   ;;  %s102_s19 = smov 70  }
   0x3   :  { %31 = vrot.lane.b32.xlu2 %v81_v2, %s101_s14  ;;  %s103_s20 = smov 56   ;;  %v82_v5 = vld [vmem:[%s159_s0 + $0x6] sm:$0x1]   ;;  %s104_s23 = smov 42   ;;  %v83_v6 = vld [vmem:[%s159_s0 + $0x5] sm:$0x1]  }
   0x4   :  { %v84_v7 = vld [vmem:[%s159_s0 + $0x4] sm:$0x1]   ;;  %s105_s28 = smov 35   ;;  %s106_s29 = smov 28   ;;  %v85_v8 = vld [vmem:[%s159_s0 + $0x3] sm:$0x1]  }
   0x5   :  { %s107_s3 = smov 21   ;;  %v86_v9 = vld [vmem:[%s159_s0 + $0x2] sm:$0x1]   ;;  %v87_v10 = vld [vmem:[%s159_s0 + $0x1] sm:$0x1]   ;;  %s108_s8 = smov 14  }
   0x6   :  { %s109_s9 = smov 7   ;;  %v2_v11 = vld [vmem:[%s159_s0] sm:$0x1]   ;;  %vm27_vm4 = vcmask 515520   ;;  %vm33_vm5 = vcmask 458120   ;;  %vm39_vm6 = vcmask 400720  }
   0x7   :  { %4 = vst.msk [vmem:[#allocation0] sm:$0x1] %vm3_vm0, %v2_v11   ;;  %vm45_vm7 = vcmask 343320   ;;  %vm51_vm8 = vcmask 285920   ;;  %vm57_vm9 = vcmask 228520   ;;  %vm63_vm10 = vcmask 171120  }
   0x8   :  { %vm69_vm11 = vcmask 113720  }
   0xa   :  { %13 = vrot.lane.b32.xlu0 %v78_v3, %s102_s19  ;;  %25 = vrot.lane.b32.xlu1 %v80_v4, %s103_s20 }
   0xb   :  { %37 = vrot.lane.b32.xlu2 %v82_v5, %s104_s23 }
  0x12   :  { %43 = vrot.lane.b32.xlu0 %v83_v6, %s105_s28  ;;  %49 = vrot.lane.b32.xlu1 %v84_v7, %s106_s29 }
  0x13   :  { %55 = vrot.lane.b32.xlu2 %v85_v8, %s107_s3 }
  0x1a   :  { %61 = vrot.lane.b32.xlu0 %v86_v9, %s108_s8  ;;  %67 = vrot.lane.b32.xlu1 %v87_v10, %s109_s9 }
  0x5d   :  { %v32_v12 = vpop.permute.xlu2 %31  }
  0x65   :  { %v38_v13 = vpop.permute.xlu2 %37  }
  0x6d   :  { %v56_v14 = vpop.permute.xlu2 %55  }
  0x74   :  { %v8_v15 = vpop.permute.xlu0 %7   ;;  %v20_v16 = vpop.permute.xlu1 %19  }
  0x75   :  { %10 = vst.msk [vmem:[#allocation0] sm:$0x1] %vm9_vm1, %v8_v15  }
  0x7c   :  { %v14_v17 = vpop.permute.xlu0 %13   ;;  %v26_v18 = vpop.permute.xlu1 %25  }
  0x7d   :  { %16 = vst.msk [vmem:[#allocation0] sm:$0x1] %vm15_vm2, %v14_v17  }
  0x7e   :  { %22 = vst.msk [vmem:[#allocation0] sm:$0x1] %vm21_vm3, %v20_v16  }
  0x7f   :  { %28 = vst.msk [vmem:[#allocation0] sm:$0x1] %vm27_vm4, %v26_v18  }
  0x80   :  { %34 = vst.msk [vmem:[#allocation0] sm:$0x1] %vm33_vm5, %v32_v12  }
  0x81   :  { %40 = vst.msk [vmem:[#allocation0] sm:$0x1] %vm39_vm6, %v38_v13  }
  0x84   :  { %v44_v19 = vpop.permute.xlu0 %43   ;;  %v50_v20 = vpop.permute.xlu1 %49  }
  0x85   :  { %46 = vst.msk [vmem:[#allocation0] sm:$0x1] %vm45_vm7, %v44_v19  }
  0x86   :  { %52 = vst.msk [vmem:[#allocation0] sm:$0x1] %vm51_vm8, %v50_v20  }
  0x87   :  { %58 = vst.msk [vmem:[#allocation0] sm:$0x1] %vm57_vm9, %v56_v14  }
  0x8c   :  { %v62_v21 = vpop.permute.xlu0 %61   ;;  %v68_v22 = vpop.permute.xlu1 %67  }
  0x8d   :  { %64 = vst.msk [vmem:[#allocation0] sm:$0x1] %vm63_vm10, %v62_v21  }
  0x8e   :  { %70 = vst.msk [vmem:[#allocation0] sm:$0x1] %vm69_vm11, %v68_v22  }
  0x95   :  { %v73_v23 = vld [vmem:[#allocation0] sm:$0x1] }
  0x96   :  { %76 = vst [vmem:[%s160_s1] sm:$0x1] %v73_v23 }

// kernel: tile.18
= control target key start
LH: loop header
LB: loop body
LE: loop exit
PB: predicated region body
PF: predicated region fallthrough
CT: control target
= control target key end

     0   :  { %s22_s0 = inlined_call_operand.vmem [shape: f32[14], index: 0, kind: input, shape index: {}]   ;;  %s23_s1 = inlined_call_operand.vmem [shape: f32[5,14], index: 1, kind: output, shape index: {}]  }
   0x1   :  { %v4_v0 = vld [vmem:[%s22_s0] ss:$0 sm:$0xff] }
   0x2   :  { %5 = vst [vmem:[%s23_s1] sm:$0xff] %v4_v0 }

// kernel: tile.19
= control target key start
LH: loop header
LB: loop body
LE: loop exit
PB: predicated region body
PF: predicated region fallthrough
CT: control target
= control target key end

     0   :  { %s43_s10 = smov 56   ;;  %s44_s11 = smov 28   ;;  %vm3_vm0 = vcmask 113664   ;;  %vm9_vm1 = vcmask 572864   ;;  %vm15_vm2 = vcmask 458064   ;;  %vm21_vm3 = vcmask 343264   ;;  %s75_s0 = inlined_call_operand.vmem [shape: f32[5,14], index: 0, kind: input, shape index: {}]   ;;  %s76_s1 = inlined_call_operand.vmem [shape: f32[1,70], index: 1, kind: output, shape index: {}]  }
   0x1   :  { %v35_v0 = vld [vmem:[%s75_s0 + $0x4] sm:$0x1]   ;;  %v37_v1 = vld [vmem:[%s75_s0 + $0x2] sm:$0x1]   ;;  %v36_v2 = vld [vmem:[%s75_s0 + $0x3] sm:$0x1]  }
   0x2   :  { %7 = vrot.lane.b32.xlu0 %v35_v0, %s43_s10  ;;  %19 = vrot.lane.b32.xlu1 %v37_v1, %s44_s11  ;;  %v38_v3 = vld [vmem:[%s75_s0 + $0x1] sm:$0x1]   ;;  %s45_s16 = smov 42   ;;  %s46_s17 = smov 14   ;;  %v2_v4 = vld [vmem:[%s75_s0] sm:$0x1]  }
   0x3   :  { %4 = vst.msk [vmem:[#allocation0] sm:$0x1] %vm3_vm0, %v2_v4   ;;  %vm27_vm4 = vcmask 228464  }
   0xa   :  { %13 = vrot.lane.b32.xlu0 %v36_v2, %s45_s16  ;;  %25 = vrot.lane.b32.xlu1 %v38_v3, %s46_s17 }
  0x74   :  { %v8_v5 = vpop.permute.xlu0 %7   ;;  %v20_v6 = vpop.permute.xlu1 %19  }
  0x75   :  { %10 = vst.msk [vmem:[#allocation0] sm:$0x1] %vm9_vm1, %v8_v5  }
  0x7c   :  { %v14_v7 = vpop.permute.xlu0 %13   ;;  %v26_v8 = vpop.permute.xlu1 %25  }
  0x7d   :  { %16 = vst.msk [vmem:[#allocation0] sm:$0x1] %vm15_vm2, %v14_v7  }
  0x7e   :  { %22 = vst.msk [vmem:[#allocation0] sm:$0x1] %vm21_vm3, %v20_v6  }
  0x7f   :  { %28 = vst.msk [vmem:[#allocation0] sm:$0x1] %vm27_vm4, %v26_v8  }
  0x86   :  { %v31_v9 = vld [vmem:[#allocation0] sm:$0x1] }
  0x87   :  { %34 = vst [vmem:[%s76_s1] sm:$0x1] %v31_v9 }

// kernel: convnet_forward.1
= control target key start
LH: loop header
LB: loop body
LE: loop exit
PB: predicated region body
PF: predicated region fallthrough
CT: control target
= control target key end

     0   :  { %s2499_s15 = smov 116   ;;  %s2500_s16 = smov 44   ;;  %vm432_vm0 = vcmask 1045504   ;;  %vm46_vm1 = vcmask 818176   ;;  %vm395_vm2 = vcmask 97280   ;;  %vm62_vm3 = vcmask 359424   ;;  %s3408_s0 = inlined_call_operand.vmem [shape: f32[8,784], index: 0, kind: input, shape index: {}]   ;;  %s3409_s1 = inlined_call_operand.vmem [shape: bf16[140,168], index: 1, kind: input, shape index: {}]   ;;  %s3410_s2 = inlined_call_operand.vmem [shape: f32[1,84], index: 2, kind: input, shape index: {}]   ;;  %s3411_s3 = inlined_call_operand.vmem [shape: bf16[3,84,140], index: 3, kind: input, shape index: {}]   ;;  %s3412_s4 = inlined_call_operand.vmem [shape: f32[1,70], index: 4, kind: input, shape index: {}]   ;;  %s3413_s5 = inlined_call_operand.vmem [shape: bf16[5,70,120], index: 5, kind: input, shape index: {}]   ;;  %s3414_s7 = inlined_call_operand.vmem [shape: bf16[120,36], index: 7, kind: input, shape index: {}]   ;;  %s3415_s6 = inlined_call_operand.vmem [shape: f32[1,120], index: 6, kind: input, shape index: {}]   ;;  %s3416_s8 = inlined_call_operand.vmem [shape: f32[1,36], index: 8, kind: input, shape index: {}]   ;;  %s3417_s9 = inlined_call_operand.vmem [shape: f32[8,36], index: 9, kind: output, shape index: {}]  }
   0x1   :  { %v2569_v0 = vld [vmem:[%s3408_s0 + $0x8] sm:$0xff]  ;;  %v35_v1 = vld [vmem:[%s3408_s0 + $0x10] sm:$0xff]  ;;  %v2577_v2 = vld [vmem:[%s3408_s0] sm:$0xff]  ;;  %s2501_s17 = smov 100   ;;  %s2502_s18 = smov 88   ;;  %vm54_vm4 = vcmask 588800  }
   0x2   :  { %v2361_v3 = vpack.i.bf16 %v35_v1, %v2569_v0  ;;  %v2351_v4 = vpack.i.bf16 %v2569_v0, %v2577_v2  ;;  %s2503_s19 = smov 16   ;;  %s2504_s20 = smov 72   ;;  %v36_v5 = vld [vmem:[%s3408_s0 + $0x18] sm:$0xff]  ;;  %v1889_v7 = vld [vmem:[%s3409_s1 + $0x70] sm:$0xf]  ;;  %v37_v10 = vld [vmem:[%s3408_s0 + $0x20] sm:$0xff] }
   0x3   :  { %s2505_s21 = smov 4   ;;  %s2506_s22 = smov 32   ;;  %v2391_v6 = vpack.i.bf16 %v36_v5, %v35_v1  ;;  %v2264_v8 = vld [vmem:[%s3409_s1 + $0x74] sm:$0xf0]  ;;  %v2263_v9 = vld [vmem:[%s3409_s1 + $0x74] sm:$0xf]  ;;  %v2607_v14 = vpack.i.bf16 %v37_v10, %v36_v5 }
   0x4   :  { %2362 = vrot.lane.b32.xlu2 %v2361_v3, %s2499_s15  ;;  %2352 = vrot.lane.b32.xlu1 %v2351_v4, %s2500_s16  ;;  %s2507_s23 = smov 60   ;;  %s2508_s26 = smov 76   ;;  %v1890_v11 = vor.u32 %v2264_v8, %v1889_v7  ;;  %v1891_v12 = vld [vmem:[%s3409_s1 + $0x78] sm:$0xf0]  ;;  %v2614_v15 = vld [vmem:[%s3408_s0 + $0x28] sm:$0xff]  ;;  %vm70_vm5 = vcmask 130048  }
   0x5   :  { %2342 = vrot.lane.b32.xlu0 %v2351_v4, %s2501_s17  ;;  %s2509_s27 = smov 104   ;;  %v1894_v13 = vor.u32 %v2263_v9, %v1891_v12  ;;  %s2511_s25 = smov 48   ;;  %v2617_v16 = vpack.i.bf16 %v2614_v15, %v37_v10  ;;  %v1881_v17 = vld [vmem:[%s3409_s1 + $0x60] sm:$0xf]  ;;  %v2262_v18 = vld [vmem:[%s3409_s1 + $0x64] sm:$0xf0] }
   0x6   :  { %439 = vmatpush.bf16.msra.mxu0 %v1890_v11  ;;  %s2512_s28 = smov 92   ;;  %v2261_v19 = vld [vmem:[%s3409_s1 + $0x64] sm:$0xf]  ;;  %v1882_v20 = vor.u32 %v2262_v18, %v1881_v17  ;;  %v1883_v21 = vld [vmem:[%s3409_s1 + $0x68] sm:$0xf0]  ;;  %vm79_vm6 = vcmask 949248  }
   0x7   :  { %577 = vmatpush.bf16.msra.mxu2 %v1894_v13  ;;  %v1873_v22 = vld [vmem:[%s3409_s1 + $0x50] sm:$0xf]  ;;  %v2260_v23 = vld [vmem:[%s3409_s1 + $0x54] sm:$0xf0]  ;;  %v1886_v24 = vor.u32 %v2261_v19, %v1883_v21  ;;  %v2259_v25 = vld [vmem:[%s3409_s1 + $0x54] sm:$0xf] }
   0x8   :  { %v1875_v26 = vld [vmem:[%s3409_s1 + $0x58] sm:$0xf0]  ;;  %v1874_v27 = vor.u32 %v2260_v23, %v1873_v22  ;;  %v1865_v29 = vld [vmem:[%s3409_s1 + $0x40] sm:$0xf]  ;;  %v2258_v30 = vld [vmem:[%s3409_s1 + $0x44] sm:$0xf0] }
   0x9   :  { %v1878_v28 = vor.u32 %v2259_v25, %v1875_v26  ;;  %v2257_v31 = vld [vmem:[%s3409_s1 + $0x44] sm:$0xf]  ;;  %v1866_v32 = vor.u32 %v2258_v30, %v1865_v29  ;;  %v1867_v33 = vld [vmem:[%s3409_s1 + $0x48] sm:$0xf0]  ;;  %v1857_v34 = vld [vmem:[%s3409_s1 + $0x30] sm:$0xf] }
   0xa   :  { %440 = vmatpush.bf16.msra.mxu0 %v1882_v20  ;;  %v2256_v35 = vld [vmem:[%s3409_s1 + $0x34] sm:$0xf0]  ;;  %v1870_v36 = vor.u32 %v2257_v31, %v1867_v33  ;;  %v2255_v37 = vld [vmem:[%s3409_s1 + $0x34] sm:$0xf]  ;;  %v1859_v38 = vld [vmem:[%s3409_s1 + $0x38] sm:$0xf0] }
   0xb   :  { %578 = vmatpush.bf16.msra.mxu2 %v1886_v24  ;;  %v1858_v39 = vor.u32 %v2256_v35, %v1857_v34  ;;  %v1862_v40 = vor.u32 %v2255_v37, %v1859_v38  ;;  %v1849_v41 = vld [vmem:[%s3409_s1 + $0x20] sm:$0xf]  ;;  %v2254_v42 = vld [vmem:[%s3409_s1 + $0x24] sm:$0xf0]  ;;  %v2253_v43 = vld [vmem:[%s3409_s1 + $0x24] sm:$0xf] }
   0xc   :  { %2367 = vrot.lane.b32.xlu2 %v2361_v3, %s2502_s18  ;;  %2357 = vrot.lane.b32.xlu1 %v2351_v4, %s2503_s19  ;;  %v1850_v44 = vor.u32 %v2254_v42, %v1849_v41  ;;  %v1851_v45 = vld [vmem:[%s3409_s1 + $0x28] sm:$0xf0]  ;;  %v1841_v46 = vld [vmem:[%s3409_s1 + $0x10] sm:$0xf]  ;;  %vm95_vm7 = vcmask 490496   ;;  %vm87_vm8 = vcmask 719872  }
   0xd   :  { %2347 = vrot.lane.b32.xlu0 %v2351_v4, %s2504_s20  ;;  %v2252_v47 = vld [vmem:[%s3409_s1 + $0x14] sm:$0xf0]  ;;  %v1854_v48 = vor.u32 %v2253_v43, %v1851_v45  ;;  %v2251_v49 = vld [vmem:[%s3409_s1 + $0x14] sm:$0xf]  ;;  %v1843_v50 = vld [vmem:[%s3409_s1 + $0x18] sm:$0xf0] }
   0xe   :  { %441 = vmatpush.bf16.msra.mxu0 %v1874_v27  ;;  %v1842_v51 = vor.u32 %v2252_v47, %v1841_v46  ;;  %v1846_v52 = vor.u32 %v2251_v49, %v1843_v50  ;;  %v1897_v53 = vld [vmem:[%s3409_s1 + $0x80] sm:$0xf]  ;;  %v2266_v54 = vld [vmem:[%s3409_s1 + $0x84] sm:$0x30]  ;;  %v2265_v55 = vld [vmem:[%s3409_s1 + $0x84] sm:$0xf] }
   0xf   :  { %579 = vmatpush.bf16.msra.mxu2 %v1878_v28  ;;  %v1898_v56 = vor.u32 %v2266_v54, %v1897_v53  ;;  %v1899_v57 = vld [vmem:[%s3409_s1 + $0x88] sm:$0x30]  ;;  %v1833_v59 = vld [vmem:[%s3409_s1] sm:$0xf]  ;;  %v2250_v60 = vld [vmem:[%s3409_s1 + $0x4] sm:$0xf0] }
  0x10   :  { %v1902_v58 = vor.u32 %v2265_v55, %v1899_v57  ;;  %v1834_v62 = vor.u32 %v2250_v60, %v1833_v59  ;;  %v2249_v63 = vld [vmem:[%s3409_s1 + $0x4] sm:$0xf]  ;;  %v1835_v1 = vld [vmem:[%s3409_s1 + $0x8] sm:$0xf0]  ;;  %vm103_vm9 = vcmask 261120   ;;  %vm114_vm10 = vcmask 31744  }
  0x11   :  { %v434_v61 = vsel %vm432_vm0, %v1898_v56, 0  ;;  %v1838_v4 = vor.u32 %v2249_v63, %v1835_v1  ;;  %vm123_vm11 = vcmask 850944   ;;  %vm131_vm12 = vcmask 621568  }
  0x12   :  { %442 = vmatpush.bf16.msra.mxu0 %v1866_v32  ;;  %515 = vmatpush.bf16.msra.mxu1 %v434_v61  ;;  %vm139_vm13 = vcmask 392192   ;;  %vm147_vm14 = vcmask 162816   ;;  %vm156_vm15 = vcmask 982016  }
  0x13   :  { %580 = vmatpush.bf16.msra.mxu2 %v1870_v36 }
  0x14   :  { %2382 = vrot.lane.b32.xlu2 %v2361_v3, %s2505_s21  ;;  %2377 = vrot.lane.b32.xlu1 %v2361_v3, %s2506_s22 }
  0x15   :  { %2372 = vrot.lane.b32.xlu0 %v2361_v3, %s2507_s23  ;;  %v437_v3 = vsel %vm432_vm0, %v1902_v58, 0  ;;  %vm164_vm0 = vcmask 752640  }
  0x16   :  { %443 = vmatpush.bf16.msra.mxu0 %v1858_v39  ;;  %653 = vmatpush.bf16.msra.mxu3 %v437_v3  ;;  %v39_v3 = vld [vmem:[%s3408_s0 + $0x30] sm:$0xff] }
  0x17   :  { %581 = vmatpush.bf16.msra.mxu2 %v1862_v40 }
  0x1a   :  { %444 = vmatpush.bf16.msra.mxu0 %v1850_v44 }
  0x1b   :  { %582 = vmatpush.bf16.msra.mxu2 %v1854_v48 }
  0x1c   :  { %2392 = vrot.lane.b32.xlu2 %v2391_v6, %s2508_s26  ;;  %2387 = vrot.lane.b32.xlu1 %v2391_v6, %s2509_s27 }
  0x1d   :  { %112 = vrot.lane.b32.xlu0 %v36_v5, %s2505_s21  ;;  %s2510_s21 = smov 20  }
  0x1e   :  { %445 = vmatpush.bf16.msra.mxu0 %v1842_v51 }
  0x1f   :  { %583 = vmatpush.bf16.msra.mxu2 %v1846_v52 }
  0x22   :  { %446 = vmatpush.bf16.msra.mxu0 %v1834_v62 }
  0x23   :  { %584 = vmatpush.bf16.msra.mxu2 %v1838_v4 }
  0x24   :  { %2407 = vrot.lane.b32.xlu2 %v2391_v6, %s2510_s21  ;;  %2402 = vrot.lane.b32.xlu1 %v2391_v6, %s2511_s25 }
  0x25   :  { %2397 = vrot.lane.b32.xlu0 %v2607_v14, %s2501_s17  ;;  %s2513_s17 = smov 120  }
  0x2c   :  { %2417 = vrot.lane.b32.xlu2 %v2617_v16, %s2500_s16  ;;  %178 = vrot.lane.b32.xlu1 %v2614_v15, %s2504_s20 }
  0x2d   :  { %2412 = vrot.lane.b32.xlu0 %v2607_v14, %s2504_s20 }
  0x34   :  { %2427 = vrot.lane.b32.xlu1 %v2607_v14, %s2512_s28  ;;  %2432 = vrot.lane.b32.xlu2 %v2617_v16, %s2503_s19 }
  0x35   :  { %2422 = vrot.lane.b32.xlu0 %v2607_v14, %s2513_s17 }
  0x3d   :  { %2437 = vrot.lane.b32.xlu0 %v2617_v16, %s2499_s15  ;;  %s2514_s15 = smov 64  }
  0x3e   :  { %2442 = vrot.lane.b32.xlu1 %v2607_v14, %s2514_s15 }
  0x5e   :  { %v2363_v5 = vpop.permute.xlu2 %2362 }
  0x5f   :  { %v2365_v38 = vunpack.i.h.bf16 %v2363_v5  ;;  %v2364_v39 = vunpack.i.l.bf16 %v2363_v5 }
  0x61   :  { %v80_v46 = vsel %vm79_vm6, %v2364_v39, %v2365_v38 }
  0x66   :  { %v2729_v6 = vpop.permute.xlu2 %2367 }
  0x67   :  { %v2370_v63 = vunpack.i.h.bf16 %v2729_v6  ;;  %v2369_v1 = vunpack.i.l.bf16 %v2729_v6 }
  0x6e   :  { %v2731_v7 = vpop.permute.xlu2 %2382 }
  0x76   :  { %v2733_v8 = vpop.permute.xlu2 %2392  ;;  %v2353_v9 = vpop.permute.xlu1 %2352 }
  0x77   :  { %v2343_v10 = vpop.permute.xlu0 %2342  ;;  %v2355_v21 = vunpack.i.h.bf16 %v2353_v9  ;;  %v2354_v22 = vunpack.i.l.bf16 %v2353_v9  ;;  %v2476_v9 = vpack.i.bf16 %v39_v3, %v2614_v15 }
  0x78   :  { %v2345_v11 = vunpack.i.h.bf16 %v2343_v10  ;;  %v2344_v12 = vunpack.i.l.bf16 %v2343_v10 }
  0x79   :  { %v63_v29 = vsel %vm62_vm3, %v2354_v22, %v2355_v21  ;;  %v2384_v22 = vunpack.i.l.bf16 %v2731_v7 }
  0x7a   :  { %v266_v13 = vpack.c.bf16 %v2345_v11, %v2569_v0  ;;  %v47_v17 = vsel %vm46_vm1, %v2344_v12, %v2345_v11  ;;  %v88_v11 = vsel %vm87_vm8, %v2369_v1, %v2370_v63 }
  0x7b   :  { %v265_v18 = vpack.c.bf16 %v47_v17, %v2577_v2 }
  0x7c   :  { %1903 = vmatmul.msk.bf16.vlgmr.msra.gmra.mxu1 %vm395_vm2, %v266_v13  ;;  %1915 = vmatmul.msk.bf16.vlgmr.msra.gmra.mxu3 %vm395_vm2, %v266_v13 }
  0x7d   :  { %447 = vmatmul.bf16.vlgmr.msra.gmra.mxu0 %v265_v18  ;;  %585 = vmatmul.bf16.vlgmr.msra.gmra.mxu2 %v265_v18 }
  0x7e   :  { %v2740_v14 = vpop.permute.xlu2 %2407  ;;  %v2358_v19 = vpop.permute.xlu1 %2357 }
  0x7f   :  { %v2348_v20 = vpop.permute.xlu0 %2347  ;;  %v2360_v36 = vunpack.i.h.bf16 %v2358_v19  ;;  %v2359_v37 = vunpack.i.l.bf16 %v2358_v19 }
  0x80   :  { %v2350_v23 = vunpack.i.h.bf16 %v2348_v20  ;;  %v2349_v24 = vunpack.i.l.bf16 %v2348_v20 }
  0x81   :  { %v71_v45 = vsel %vm70_vm5, %v2359_v37, %v2360_v36  ;;  %v270_v47 = vpack.c.bf16 %v2365_v38, %v2360_v36 }
  0x82   :  { %v55_v28 = vsel %vm54_vm4, %v2349_v24, %v2350_v23  ;;  %v268_v31 = vpack.c.bf16 %v2355_v21, %v2350_v23  ;;  %v269_v52 = vpack.c.bf16 %v80_v46, %v71_v45  ;;  %v2385_v21 = vunpack.i.h.bf16 %v2731_v7 }
  0x83   :  { %v267_v33 = vpack.c.bf16 %v63_v29, %v55_v28  ;;  %v2395_v7 = vunpack.i.h.bf16 %v2733_v8  ;;  %v2394_v28 = vunpack.i.l.bf16 %v2733_v8  ;;  %v2409_v8 = vunpack.i.l.bf16 %v2740_v14 }
  0x86   :  { %v2418_v0 = vpop.permute.xlu2 %2417  ;;  %v2742_v25 = vpop.permute.xlu1 %2377 }
  0x87   :  { %v2420_v2 = vunpack.i.h.bf16 %v2418_v0  ;;  %v2419_v26 = vunpack.i.l.bf16 %v2418_v0  ;;  %v2373_v27 = vpop.permute.xlu0 %2372  ;;  %v2380_v15 = vunpack.i.h.bf16 %v2742_v25  ;;  %v2379_v20 = vunpack.i.l.bf16 %v2742_v25 }
  0x88   :  { %v2375_v61 = vunpack.i.h.bf16 %v2373_v27  ;;  %v2374_v62 = vunpack.i.l.bf16 %v2373_v27 }
  0x89   :  { %v186_v30 = vsel %vm62_vm3, %v2419_v26, %v2420_v2  ;;  %v104_v24 = vsel %vm103_vm9, %v2379_v20, %v2380_v15  ;;  %v115_v2 = vsel %vm114_vm10, %v2384_v22, %v2385_v21 }
  0x8a   :  { %v2456_v32 = vpack.i.bf16 %v186_v30, %v2419_v26  ;;  %v96_v5 = vsel %vm95_vm7, %v2374_v62, %v2375_v61  ;;  %v272_v10 = vpack.c.bf16 %v2375_v61, %v2370_v63  ;;  %v273_v26 = vpack.c.bf16 %v115_v2, %v104_v24 }
  0x8b   :  { %v271_v12 = vpack.c.bf16 %v96_v5, %v88_v11 }
  0x8c   :  { %1904 = vmatmul.msk.bf16.gmra.mxu1 %vm395_vm2, %v268_v31  ;;  %1916 = vmatmul.msk.bf16.gmra.mxu3 %vm395_vm2, %v268_v31  ;;  %v132_v31 = vsel %vm131_vm12, %v2394_v28, %v2395_v7 }
  0x8d   :  { %2457 = vrot.lane.b32.xlu1 %v2456_v32, %s2514_s15  ;;  %452 = vmatmul.bf16.gmra.mxu0 %v267_v33 }
  0x8e   :  { %590 = vmatmul.bf16.gmra.mxu2 %v267_v33  ;;  %v2750_v34 = vpop.permute.xlu1 %2387  ;;  %v2433_v40 = vpop.permute.xlu2 %2432 }
  0x8f   :  { %v2752_v35 = vpop.permute.xlu0 %112  ;;  %v2435_v49 = vunpack.i.h.bf16 %v2433_v40  ;;  %v2434_v50 = vunpack.i.l.bf16 %v2433_v40  ;;  %v2390_v25 = vunpack.i.h.bf16 %v2750_v34  ;;  %v2389_v27 = vunpack.i.l.bf16 %v2750_v34 }
  0x90   :  { %v116_v23 = vsel %vm114_vm10, %v2385_v21, %v2752_v35  ;;  %v2410_v35 = vunpack.i.h.bf16 %v2740_v14 }
  0x91   :  { %v274_v0 = vpack.c.bf16 %v116_v23, %v2380_v15  ;;  %v124_v29 = vsel %vm123_vm11, %v2389_v27, %v2390_v25  ;;  %v276_v30 = vpack.c.bf16 %v2395_v7, %v2390_v25 }
  0x92   :  { %v275_v32 = vpack.c.bf16 %v132_v31, %v124_v29  ;;  %v148_v38 = vsel %vm147_vm14, %v2409_v8, %v2410_v35 }
  0x95   :  { %2472 = vrot.lane.b32.xlu1 %v2617_v16, %s2502_s18  ;;  %v191_v16 = vsel %vm70_vm5, %v2434_v50, %v2435_v49  ;;  %vm1403_vm5 = vcmask 474112  }
  0x96   :  { %v2756_v41 = vpop.permute.xlu1 %2402  ;;  %v2461_v57 = vpack.i.bf16 %v191_v16, %v2434_v50 }
  0x97   :  { %v2398_v42 = vpop.permute.xlu0 %2397  ;;  %v2405_v33 = vunpack.i.h.bf16 %v2756_v41  ;;  %v2404_v34 = vunpack.i.l.bf16 %v2756_v41 }
  0x98   :  { %v2400_v43 = vunpack.i.h.bf16 %v2398_v42  ;;  %v2399_v44 = vunpack.i.l.bf16 %v2398_v42 }
  0x99   :  { %v140_v36 = vsel %vm139_vm13, %v2404_v34, %v2405_v33  ;;  %v278_v37 = vpack.c.bf16 %v2410_v35, %v2405_v33 }
  0x9a   :  { %v172_v48 = vsel %vm46_vm1, %v2399_v44, %v2400_v43  ;;  %v277_v39 = vpack.c.bf16 %v148_v38, %v140_v36  ;;  %vm240_vm1 = vcmask 523264  }
  0x9b   :  { %v2446_v51 = vpack.i.bf16 %v2400_v43, %v172_v48 }
  0x9c   :  { %1905 = vmatmul.msk.bf16.gmra.mxu1 %vm395_vm2, %v270_v47  ;;  %1917 = vmatmul.msk.bf16.gmra.mxu3 %vm395_vm2, %v270_v47 }
  0x9d   :  { %2447 = vrot.lane.b32.xlu2 %v2446_v51, %s2514_s15  ;;  %457 = vmatmul.bf16.gmra.mxu0 %v269_v52 }
  0x9e   :  { %595 = vmatmul.bf16.gmra.mxu2 %v269_v52  ;;  %v179_v54 = vpop.permute.xlu1 %178 }
  0x9f   :  { %v2413_v53 = vpop.permute.xlu0 %2412 }
  0xa0   :  { %v2415_v55 = vunpack.i.h.bf16 %v2413_v53  ;;  %v2414_v56 = vunpack.i.l.bf16 %v2413_v53 }
  0xa2   :  { %v180_v58 = vsel %vm54_vm4, %v2414_v56, %v2415_v55  ;;  %v181_v59 = vsel %vm54_vm4, %v2415_v55, %v179_v54  ;;  %vm979_vm4 = vcmask 1041408  }
  0xa3   :  { %v2451_v60 = vpack.i.bf16 %v181_v59, %v180_v58 }
  0xa5   :  { %2452 = vrot.lane.b32.xlu0 %v2451_v60, %s2514_s15  ;;  %2462 = vrot.lane.b32.xlu2 %v2461_v57, %s2514_s15 }
  0xa6   :  { %v2428_v40 = vpop.permute.xlu1 %2427 }
  0xa7   :  { %v2774_v4 = vpop.permute.xlu0 %2422  ;;  %v2430_v43 = vunpack.i.h.bf16 %v2428_v40  ;;  %v2429_v44 = vunpack.i.l.bf16 %v2428_v40 }
  0xa8   :  { %v2425_v42 = vunpack.i.h.bf16 %v2774_v4  ;;  %v2424_v41 = vunpack.i.l.bf16 %v2774_v4 }
  0xa9   :  { %v165_v45 = vsel %vm164_vm0, %v2429_v44, %v2430_v43 }
  0xaa   :  { %v157_v14 = vsel %vm156_vm15, %v2424_v41, %v2425_v42  ;;  %v280_v46 = vpack.c.bf16 %v2430_v43, %v2425_v42 }
  0xab   :  { %v279_v47 = vpack.c.bf16 %v165_v45, %v157_v14  ;;  %v1937_v45 = vld [vmem:[%s3411_s3 + $0xa8] sm:$0x33] }
  0xac   :  { %1906 = vmatmul.msk.bf16.gmra.mxu1 %vm395_vm2, %v272_v10  ;;  %1918 = vmatmul.msk.bf16.gmra.mxu3 %vm395_vm2, %v272_v10 }
  0xad   :  { %2477 = vrot.lane.b32.xlu2 %v2476_v9, %s2507_s23  ;;  %462 = vmatmul.bf16.gmra.mxu0 %v271_v12 }
  0xae   :  { %600 = vmatmul.bf16.gmra.mxu2 %v271_v12 }
  0xaf   :  { %v2438_v6 = vpop.permute.xlu0 %2437 }
  0xb0   :  { %v2440_v13 = vunpack.i.h.bf16 %v2438_v6  ;;  %v2439_v17 = vunpack.i.l.bf16 %v2438_v6  ;;  %v2443_v48 = vpop.permute.xlu1 %2442 }
  0xb1   :  { %v2445_v49 = vunpack.i.h.bf16 %v2443_v48  ;;  %v2444_v50 = vunpack.i.l.bf16 %v2443_v48  ;;  %v939_v48 = vunpack.c.l.b16 %v1937_v45 }
  0xb2   :  { %v196_v18 = vsel %vm79_vm6, %v2439_v17, %v2440_v13  ;;  %vm1481_vm6 = vcmask 572416  }
  0xb3   :  { %v2466_v19 = vpack.i.bf16 %v2440_v13, %v196_v18  ;;  %v241_v53 = vsel %vm240_vm1, %v2444_v50, %v2445_v49 }
  0xb5   :  { %2467 = vrot.lane.b32.xlu0 %v2466_v19, %s2514_s15 }
  0xbc   :  { %1907 = vmatmul.msk.bf16.gmra.mxu1 %vm395_vm2, %v274_v0  ;;  %1919 = vmatmul.msk.bf16.gmra.mxu3 %vm395_vm2, %v274_v0 }
  0xbd   :  { %467 = vmatmul.bf16.gmra.mxu0 %v273_v26 }
  0xbe   :  { %605 = vmatmul.bf16.gmra.mxu2 %v273_v26 }
  0xcc   :  { %1908 = vmatmul.msk.bf16.gmra.mxu1 %vm395_vm2, %v276_v30  ;;  %1920 = vmatmul.msk.bf16.gmra.mxu3 %vm395_vm2, %v276_v30 }
  0xcd   :  { %472 = vmatmul.bf16.gmra.mxu0 %v275_v32 }
  0xce   :  { %610 = vmatmul.bf16.gmra.mxu2 %v275_v32 }
  0xdc   :  { %1909 = vmatmul.msk.bf16.gmra.mxu1 %vm395_vm2, %v278_v37  ;;  %1921 = vmatmul.msk.bf16.gmra.mxu3 %vm395_vm2, %v278_v37 }
  0xdd   :  { %477 = vmatmul.bf16.gmra.mxu0 %v277_v39 }
  0xde   :  { %615 = vmatmul.bf16.gmra.mxu2 %v277_v39 }
  0xec   :  { %1910 = vmatmul.msk.bf16.gmra.mxu1 %vm395_vm2, %v280_v46  ;;  %1922 = vmatmul.msk.bf16.gmra.mxu3 %vm395_vm2, %v280_v46 }
  0xed   :  { %482 = vmatmul.bf16.gmra.mxu0 %v279_v47 }
  0xee   :  { %620 = vmatmul.bf16.gmra.mxu2 %v279_v47 }
  0xf7   :  { %v2448_v51 = vpop.permute.xlu2 %2447 }
  0xf8   :  { %v2450_v52 = vunpack.i.h.bf16 %v2448_v51  ;;  %v2449_v16 = vunpack.i.l.bf16 %v2448_v51 }
  0xf9   :  { %v517_v54 = vpop.f32.mrf.mxu1 }
  0xfa   :  { %v282_v55 = vpack.c.bf16 %v2450_v52, %v2445_v49  ;;  %v448_v56 = vpop.f32.mrf.mxu0  ;;  %v242_v57 = vsel %vm240_vm1, %v2449_v16, %v2450_v52  ;;  %v951_v52 = vpack.c.b16 %v939_v48, %v939_v48  ;;  %v940_v16 = vunpack.c.h.b16 %v1937_v45 }
  0xfb   :  { %v2810_v58 = vadd.f32 %v517_v54, %v448_v56  ;;  %v281_v59 = vpack.c.bf16 %v242_v57, %v241_v53 }
  0xfc   :  { %1911 = vmatmul.msk.bf16.gmra.mxu1 %vm395_vm2, %v282_v55  ;;  %1923 = vmatmul.msk.bf16.gmra.mxu3 %vm395_vm2, %v282_v55  ;;  %v981_v54 = vsel %vm979_vm4, %v951_v52, 0  ;;  %v952_v55 = vpack.c.b16 %v940_v16, %v940_v16 }
  0xfd   :  { %487 = vmatmul.bf16.gmra.mxu0 %v281_v59  ;;  %988 = vmatpush.bf16.msrb.mxu1 %v981_v54 }
  0xfe   :  { %625 = vmatmul.bf16.gmra.mxu2 %v281_v59 }
  0xff   :  { %v2458_v60 = vpop.permute.xlu1 %2457  ;;  %v2814_v61 = vpop.permute.xlu2 %2462 }
 0x100   :  { %v655_v62 = vpop.f32.mrf.mxu3  ;;  %v586_v63 = vpop.f32.mrf.mxu2  ;;  %v2460_v27 = vunpack.i.h.bf16 %v2458_v60  ;;  %v2459_v7 = vunpack.i.l.bf16 %v2458_v60  ;;  %v2465_v49 = vunpack.i.h.bf16 %v2814_v61  ;;  %v2464_v50 = vunpack.i.l.bf16 %v2814_v61 }
 0x101   :  { %v2816_v1 = vadd.f32 %v655_v62, %v586_v63  ;;  %v2818_v3 = vpop.f32.mrf.mxu1  ;;  %v984_v61 = vsel %vm979_vm4, %v952_v55, 0 }
 0x102   :  { %v2820_v4 = vpop.f32.mrf.mxu0  ;;  %v244_v35 = vsel %vm240_vm1, %v2459_v7, %v2460_v27  ;;  %v245_v63 = vsel %vm240_vm1, %v2464_v50, %v2465_v49  ;;  %1022 = vmatpush.bf16.msrb.mxu3 %v984_v61 }
 0x107   :  { %v2473_v5 = vpop.permute.xlu1 %2472  ;;  %v2478_v9 = vpop.permute.xlu2 %2477 }
 0x108   :  { %v2475_v10 = vunpack.i.h.bf16 %v2473_v5  ;;  %v2474_v11 = vunpack.i.l.bf16 %v2473_v5  ;;  %v2480_v12 = vunpack.i.h.bf16 %v2478_v9  ;;  %v2479_v6 = vunpack.i.l.bf16 %v2478_v9  ;;  %v2822_v13 = vpop.f32.mrf.mxu3  ;;  %v2824_v17 = vpop.f32.mrf.mxu2 }
 0x109   :  { %v522_v18 = vpop.f32.mrf.mxu1 }
 0x10a   :  { %v201_v19 = vsel %vm87_vm8, %v2474_v11, %v2475_v10  ;;  %v207_v15 = vsel %vm95_vm7, %v2479_v6, %v2480_v12  ;;  %v453_v20 = vpop.f32.mrf.mxu0  ;;  %vm1796_vm7 = vcmask 1043456   ;;  %vm1813_vm8 = vcmask 293888  }
 0x10b   :  { %v2481_v21 = vpack.i.bf16 %v2475_v10, %v201_v19  ;;  %v2486_v22 = vpack.i.bf16 %v207_v15, %v2479_v6  ;;  %v523_v26 = vadd.f32 %v522_v18, %v453_v20 }
 0x10d   :  { %2482 = vrot.lane.b32.xlu0 %v2481_v21, %s2514_s15  ;;  %2487 = vrot.lane.b32.xlu1 %v2486_v22, %s2514_s15 }
 0x110   :  { %v660_v23 = vpop.f32.mrf.mxu3 }
 0x111   :  { %v591_v24 = vpop.f32.mrf.mxu2  ;;  %v524_v0 = vpop.f32.mrf.mxu1 }
 0x112   :  { %v455_v2 = vpop.f32.mrf.mxu0  ;;  %v661_v8 = vadd.f32 %v660_v23, %v591_v24 }
 0x113   :  { %v525_v25 = vadd.f32 %v524_v0, %v455_v2 }
 0x115   :  { %v2830_v28 = vmax.f32 %v523_v26, %v525_v25 }
 0x117   :  { %v2453_v29 = vpop.permute.xlu0 %2452  ;;  %767 = vrot.lane.b32.xlu2 %v2830_v28, %s2500_s16 }
 0x118   :  { %v2455_v30 = vunpack.i.h.bf16 %v2453_v29  ;;  %v2454_v31 = vunpack.i.l.bf16 %v2453_v29  ;;  %v662_v32 = vpop.f32.mrf.mxu3 }
 0x119   :  { %v593_v33 = vpop.f32.mrf.mxu2  ;;  %v527_v34 = vpop.f32.mrf.mxu1 }
 0x11a   :  { %v284_v36 = vpack.c.bf16 %v2460_v27, %v2455_v30  ;;  %v663_v37 = vadd.f32 %v662_v32, %v593_v33  ;;  %v458_v38 = vpop.f32.mrf.mxu0  ;;  %v243_v39 = vsel %vm240_vm1, %v2454_v31, %v2455_v30 }
 0x11b   :  { %v283_v40 = vpack.c.bf16 %v244_v35, %v243_v39  ;;  %v528_v46 = vadd.f32 %v527_v34, %v458_v38  ;;  %v1972_v34 = vld [vmem:[%s3411_s3 + $0x98] sm:$0xf]  ;;  %v2286_v35 = vld [vmem:[%s3411_s3 + $0x9c] sm:$0xf0]  ;;  %v2285_v39 = vld [vmem:[%s3411_s3 + $0x9c] sm:$0xf] }
 0x11c   :  { %v718_v42 = vmax.f32 %v661_v8, %v663_v37  ;;  %1912 = vmatmul.msk.bf16.gmra.mxu1 %vm395_vm2, %v284_v36  ;;  %1924 = vmatmul.msk.bf16.gmra.mxu3 %vm395_vm2, %v284_v36  ;;  %v1973_v37 = vor.u32 %v2286_v35, %v1972_v34 }
 0x11d   :  { %630 = vmatmul.bf16.gmra.mxu2 %v283_v40  ;;  %492 = vmatmul.bf16.gmra.mxu0 %v283_v40  ;;  %v1974_v40 = vld [vmem:[%s3411_s3 + $0xa0] sm:$0xf0] }
 0x11e   :  { %769 = vrot.lane.b32.xlu0 %v718_v42, %s2500_s16  ;;  %989 = vmatpush.bf16.msrb.mxu1 %v1973_v37  ;;  %v1977_v42 = vor.u32 %v2285_v39, %v1974_v40 }
 0x120   :  { %v665_v41 = vpop.f32.mrf.mxu3  ;;  %1023 = vmatpush.bf16.msrb.mxu3 %v1977_v42  ;;  %v1956_v42 = vld [vmem:[%s3411_s3 + $0x78] sm:$0xf] }
 0x121   :  { %v596_v43 = vpop.f32.mrf.mxu2  ;;  %v529_v44 = vpop.f32.mrf.mxu1 }
 0x122   :  { %v460_v14 = vpop.f32.mrf.mxu0  ;;  %v666_v5 = vadd.f32 %v665_v41, %v596_v43 }
 0x123   :  { %v530_v47 = vadd.f32 %v529_v44, %v460_v14 }
 0x125   :  { %v2844_v51 = vmax.f32 %v528_v46, %v530_v47 }
 0x127   :  { %v2468_v53 = vpop.permute.xlu0 %2467  ;;  %771 = vrot.lane.b32.xlu1 %v2844_v51, %s2500_s16 }
 0x128   :  { %v2470_v56 = vunpack.i.h.bf16 %v2468_v53  ;;  %v2469_v57 = vunpack.i.l.bf16 %v2468_v53  ;;  %v667_v59 = vpop.f32.mrf.mxu3 }
 0x129   :  { %v598_v60 = vpop.f32.mrf.mxu2  ;;  %v532_v62 = vpop.f32.mrf.mxu1 }
 0x12a   :  { %v286_v9 = vpack.c.bf16 %v2470_v56, %v2465_v49  ;;  %v668_v10 = vadd.f32 %v667_v59, %v598_v60  ;;  %v463_v11 = vpop.f32.mrf.mxu0  ;;  %v246_v12 = vsel %vm240_vm1, %v2469_v57, %v2470_v56 }
 0x12b   :  { %v285_v6 = vpack.c.bf16 %v246_v12, %v245_v63  ;;  %v533_v22 = vadd.f32 %v532_v62, %v463_v11  ;;  %v1964_v11 = vld [vmem:[%s3411_s3 + $0x88] sm:$0xf]  ;;  %v2284_v12 = vld [vmem:[%s3411_s3 + $0x8c] sm:$0xf0] }
 0x12c   :  { %v720_v18 = vmax.f32 %v666_v5, %v668_v10  ;;  %1913 = vmatmul.msk.bf16.gmra.mxu1 %vm395_vm2, %v286_v9  ;;  %1925 = vmatmul.msk.bf16.gmra.mxu3 %vm395_vm2, %v286_v9 }
 0x12d   :  { %497 = vmatmul.bf16.gmra.mxu0 %v285_v6  ;;  %635 = vmatmul.bf16.gmra.mxu2 %v285_v6 }
 0x12e   :  { %773 = vrot.lane.b32.xlu2 %v720_v18, %s2500_s16 }
 0x130   :  { %v670_v19 = vpop.f32.mrf.mxu3 }
 0x131   :  { %v601_v15 = vpop.f32.mrf.mxu2  ;;  %v534_v20 = vpop.f32.mrf.mxu1 }
 0x132   :  { %v465_v21 = vpop.f32.mrf.mxu0  ;;  %v671_v25 = vadd.f32 %v670_v19, %v601_v15  ;;  %v1965_v19 = vor.u32 %v2284_v12, %v1964_v11 }
 0x133   :  { %v535_v23 = vadd.f32 %v534_v20, %v465_v21  ;;  %v2283_v20 = vld [vmem:[%s3411_s3 + $0x8c] sm:$0xf]  ;;  %v1966_v21 = vld [vmem:[%s3411_s3 + $0x90] sm:$0xf0] }
 0x134   :  { %990 = vmatpush.bf16.msrb.mxu1 %v1965_v19 }
 0x135   :  { %v2855_v24 = vmax.f32 %v533_v22, %v535_v23  ;;  %v1969_v22 = vor.u32 %v2283_v20, %v1966_v21 }
 0x137   :  { %775 = vrot.lane.b32.xlu0 %v2855_v24, %s2500_s16  ;;  %1024 = vmatpush.bf16.msrb.mxu3 %v1969_v22 }
 0x138   :  { %v672_v0 = vpop.f32.mrf.mxu3 }
 0x139   :  { %v603_v2 = vpop.f32.mrf.mxu2  ;;  %v537_v26 = vpop.f32.mrf.mxu1 }
 0x13a   :  { %v673_v27 = vadd.f32 %v672_v0, %v603_v2  ;;  %v468_v7 = vpop.f32.mrf.mxu0 }
 0x13b   :  { %v538_v8 = vadd.f32 %v537_v26, %v468_v7 }
 0x13c   :  { %v722_v29 = vmax.f32 %v671_v25, %v673_v27 }
 0x13e   :  { %777 = vrot.lane.b32.xlu1 %v722_v29, %s2500_s16  ;;  %v890_v29 = vld [vmem:[%s3411_s3 + $0x50] sm:$0x33] }
 0x13f   :  { %v1086_v40 = vunpack.c.h.b16 %v890_v29 }
 0x140   :  { %v675_v30 = vpop.f32.mrf.mxu3 }
 0x141   :  { %v606_v31 = vpop.f32.mrf.mxu2  ;;  %v539_v32 = vpop.f32.mrf.mxu1 }
 0x142   :  { %v470_v33 = vpop.f32.mrf.mxu0  ;;  %v676_v14 = vadd.f32 %v675_v30, %v606_v31  ;;  %v1085_v30 = vunpack.c.l.b16 %v890_v29 }
 0x143   :  { %v540_v36 = vadd.f32 %v539_v32, %v470_v33 }
 0x144   :  { %v1097_v34 = vpack.c.b16 %v1085_v30, %v1085_v30 }
 0x145   :  { %v2866_v38 = vmax.f32 %v538_v8, %v540_v36 }
 0x146   :  { %v1125_v37 = vsel %vm979_vm4, %v1097_v34, 0 }
 0x147   :  { %779 = vrot.lane.b32.xlu2 %v2866_v38, %s2500_s16  ;;  %1132 = vmatpush.bf16.msrb.mxu0 %v1125_v37  ;;  %v2022_v37 = vld [vmem:[%s3411_s3 + $0x40] sm:$0xf] }
 0x148   :  { %v677_v41 = vpop.f32.mrf.mxu3 }
 0x149   :  { %v608_v43 = vpop.f32.mrf.mxu2  ;;  %v542_v44 = vpop.f32.mrf.mxu1 }
 0x14a   :  { %v678_v45 = vadd.f32 %v677_v41, %v608_v43  ;;  %v473_v46 = vpop.f32.mrf.mxu0  ;;  %v2282_v41 = vld [vmem:[%s3411_s3 + $0x7c] sm:$0xf0]  ;;  %v2281_v43 = vld [vmem:[%s3411_s3 + $0x7c] sm:$0xf] }
 0x14b   :  { %v543_v16 = vadd.f32 %v542_v44, %v473_v46  ;;  %v1957_v44 = vor.u32 %v2282_v41, %v1956_v42  ;;  %v1098_v46 = vpack.c.b16 %v1086_v40, %v1086_v40  ;;  %v2276_v40 = vld [vmem:[%s3411_s3 + $0x44] sm:$0xf0] }
 0x14c   :  { %v724_v47 = vmax.f32 %v676_v14, %v678_v45  ;;  %v1958_v14 = vld [vmem:[%s3411_s3 + $0x80] sm:$0xf0]  ;;  %v2023_v41 = vor.u32 %v2276_v40, %v2022_v37 }
 0x14d   :  { %991 = vmatpush.bf16.msrb.mxu1 %v1957_v44 }
 0x14e   :  { %781 = vrot.lane.b32.xlu0 %v724_v47, %s2500_s16  ;;  %v1961_v47 = vor.u32 %v2281_v43, %v1958_v14  ;;  %1133 = vmatpush.bf16.msrb.mxu0 %v2023_v41  ;;  %v2964_v14 = vld [vmem:[%s3410_s2] ss:$0 sm:$0xff] }
 0x150   :  { %v680_v48 = vpop.f32.mrf.mxu3  ;;  %1025 = vmatpush.bf16.msrb.mxu3 %v1961_v47  ;;  %v2275_v47 = vld [vmem:[%s3411_s3 + $0x44] sm:$0xf] }
 0x151   :  { %v611_v49 = vpop.f32.mrf.mxu2  ;;  %v544_v50 = vpop.f32.mrf.mxu1 }
 0x152   :  { %v475_v52 = vpop.f32.mrf.mxu0  ;;  %v681_v59 = vadd.f32 %v680_v48, %v611_v49 }
 0x153   :  { %v545_v53 = vadd.f32 %v544_v50, %v475_v52 }
 0x155   :  { %v2877_v54 = vmax.f32 %v543_v16, %v545_v53  ;;  %v1128_v53 = vsel %vm979_vm4, %v1098_v46, 0 }
 0x156   :  { %1166 = vmatpush.bf16.msrb.mxu2 %v1128_v53 }
 0x157   :  { %783 = vrot.lane.b32.xlu1 %v2877_v54, %s2500_s16 }
 0x158   :  { %v682_v55 = vpop.f32.mrf.mxu3 }
 0x159   :  { %v613_v56 = vpop.f32.mrf.mxu2  ;;  %v547_v57 = vpop.f32.mrf.mxu1 }
 0x15a   :  { %v683_v60 = vadd.f32 %v682_v55, %v613_v56  ;;  %v478_v62 = vpop.f32.mrf.mxu0  ;;  %v1948_v55 = vld [vmem:[%s3411_s3 + $0x68] sm:$0xf]  ;;  %v2280_v56 = vld [vmem:[%s3411_s3 + $0x6c] sm:$0xf0] }
 0x15b   :  { %v548_v6 = vadd.f32 %v547_v57, %v478_v62  ;;  %v1949_v57 = vor.u32 %v2280_v56, %v1948_v55 }
 0x15c   :  { %v726_v63 = vmax.f32 %v681_v59, %v683_v60  ;;  %v2279_v59 = vld [vmem:[%s3411_s3 + $0x6c] sm:$0xf]  ;;  %v1950_v60 = vld [vmem:[%s3411_s3 + $0x70] sm:$0xf0] }
 0x15d   :  { %992 = vmatpush.bf16.msrb.mxu1 %v1949_v57 }
 0x15e   :  { %785 = vrot.lane.b32.xlu2 %v726_v63, %s2500_s16  ;;  %v1953_v63 = vor.u32 %v2279_v59, %v1950_v60 }
 0x160   :  { %v685_v61 = vpop.f32.mrf.mxu3  ;;  %1026 = vmatpush.bf16.msrb.mxu3 %v1953_v63 }
 0x161   :  { %v616_v5 = vpop.f32.mrf.mxu2  ;;  %v549_v9 = vpop.f32.mrf.mxu1 }
 0x162   :  { %v480_v10 = vpop.f32.mrf.mxu0  ;;  %v686_v26 = vadd.f32 %v685_v61, %v616_v5  ;;  %v1940_v61 = vld [vmem:[%s3411_s3 + $0x58] sm:$0xf]  ;;  %v2278_v5 = vld [vmem:[%s3411_s3 + $0x5c] sm:$0xf0] }
 0x163   :  { %v550_v18 = vadd.f32 %v549_v9, %v480_v10  ;;  %v2277_v9 = vld [vmem:[%s3411_s3 + $0x5c] sm:$0xf]  ;;  %v1941_v12 = vor.u32 %v2278_v5, %v1940_v61 }
 0x165   :  { %v2888_v15 = vmax.f32 %v548_v6, %v550_v18  ;;  %v1942_v6 = vld [vmem:[%s3411_s3 + $0x60] sm:$0xf0]  ;;  %993 = vmatpush.bf16.msrb.mxu1 %v1941_v12 }
 0x167   :  { %787 = vrot.lane.b32.xlu0 %v2888_v15, %s2500_s16 }
 0x168   :  { %v687_v23 = vpop.f32.mrf.mxu3 }
 0x169   :  { %v618_v0 = vpop.f32.mrf.mxu2  ;;  %v552_v2 = vpop.f32.mrf.mxu1 }
 0x16a   :  { %v688_v25 = vadd.f32 %v687_v23, %v618_v0  ;;  %v483_v27 = vpop.f32.mrf.mxu0 }
 0x16b   :  { %v553_v8 = vadd.f32 %v552_v2, %v483_v27  ;;  %v1945_v2 = vor.u32 %v2277_v9, %v1942_v6 }
 0x16c   :  { %v728_v7 = vmax.f32 %v686_v26, %v688_v25 }
 0x16d   :  { %1027 = vmatpush.bf16.msrb.mxu3 %v1945_v2 }
 0x16e   :  { %789 = vrot.lane.b32.xlu1 %v728_v7, %s2500_s16 }
 0x170   :  { %v690_v31 = vpop.f32.mrf.mxu3 }
 0x171   :  { %v621_v32 = vpop.f32.mrf.mxu2  ;;  %v554_v33 = vpop.f32.mrf.mxu1 }
 0x172   :  { %v485_v35 = vpop.f32.mrf.mxu0  ;;  %v691_v50 = vadd.f32 %v690_v31, %v621_v32  ;;  %v768_v42 = vpop.permute.xlu2 %767 }
 0x173   :  { %v555_v36 = vadd.f32 %v554_v33, %v485_v35 }
 0x175   :  { %v2903_v39 = vmax.f32 %v553_v8, %v555_v36 }
 0x177   :  { %791 = vrot.lane.b32.xlu2 %v2903_v39, %s2500_s16 }
 0x178   :  { %v692_v45 = vpop.f32.mrf.mxu3 }
 0x179   :  { %v623_v48 = vpop.f32.mrf.mxu2  ;;  %v557_v49 = vpop.f32.mrf.mxu1 }
 0x17a   :  { %v693_v52 = vadd.f32 %v692_v45, %v623_v48  ;;  %v488_v16 = vpop.f32.mrf.mxu0  ;;  %v2024_v48 = vld [vmem:[%s3411_s3 + $0x48] sm:$0xf0] }
 0x17b   :  { %v558_v29 = vadd.f32 %v557_v49, %v488_v16 }
 0x17c   :  { %v730_v62 = vmax.f32 %v691_v50, %v693_v52  ;;  %v2027_v52 = vor.u32 %v2275_v47, %v2024_v48 }
 0x17e   :  { %793 = vrot.lane.b32.xlu0 %v730_v62, %s2500_s16  ;;  %1167 = vmatpush.bf16.msrb.mxu2 %v2027_v52 }
 0x17f   :  { %v2483_v10 = vpop.permute.xlu0 %2482  ;;  %v2488_v11 = vpop.permute.xlu1 %2487 }
 0x180   :  { %v2485_v18 = vunpack.i.h.bf16 %v2483_v10  ;;  %v2484_v19 = vunpack.i.l.bf16 %v2483_v10  ;;  %v2490_v20 = vunpack.i.h.bf16 %v2488_v11  ;;  %v2489_v21 = vunpack.i.l.bf16 %v2488_v11  ;;  %v695_v22 = vpop.f32.mrf.mxu3 }
 0x181   :  { %v626_v23 = vpop.f32.mrf.mxu2  ;;  %v559_v0 = vpop.f32.mrf.mxu1 }
 0x182   :  { %v288_v26 = vpack.c.bf16 %v2490_v20, %v2485_v18  ;;  %v490_v25 = vpop.f32.mrf.mxu0  ;;  %v247_v27 = vsel %vm240_vm1, %v2484_v19, %v2485_v18  ;;  %v248_v7 = vsel %vm240_vm1, %v2489_v21, %v2490_v20  ;;  %v696_v35 = vadd.f32 %v695_v22, %v626_v23 }
 0x183   :  { %v560_v30 = vadd.f32 %v559_v0, %v490_v25  ;;  %v287_v31 = vpack.c.bf16 %v248_v7, %v247_v27  ;;  %v520_v22 = vadd.f32 %v2818_v3, %v2820_v4  ;;  %v2014_v7 = vld [vmem:[%s3411_s3 + $0x30] sm:$0xf] }
 0x184   :  { %1914 = vmatmul.msk.bf16.gmra.mxu1 %vm395_vm2, %v288_v26  ;;  %1926 = vmatmul.msk.bf16.gmra.mxu3 %vm395_vm2, %v288_v26  ;;  %vm963_vm2 = vcmask 687104  }
 0x185   :  { %v2949_v32 = vmax.f32 %v558_v29, %v560_v30  ;;  %502 = vmatmul.bf16.gmra.mxu0 %v287_v31  ;;  %640 = vmatmul.bf16.gmra.mxu2 %v287_v31  ;;  %v2274_v29 = vld [vmem:[%s3411_s3 + $0x34] sm:$0xf0]  ;;  %v2273_v30 = vld [vmem:[%s3411_s3 + $0x34] sm:$0xf] }
 0x186   :  { %v2015_v31 = vor.u32 %v2274_v29, %v2014_v7  ;;  %v2083_v7 = vld [vmem:[%s3411_s3 + $0xf0] sm:$0xf] }
 0x187   :  { %795 = vrot.lane.b32.xlu1 %v2949_v32, %s2500_s16 }
 0x188   :  { %v697_v33 = vpop.f32.mrf.mxu3  ;;  %v774_v46 = vpop.permute.xlu2 %773  ;;  %1134 = vmatpush.bf16.msrb.mxu0 %v2015_v31 }
 0x189   :  { %v628_v34 = vpop.f32.mrf.mxu2 }
 0x18a   :  { %v698_v8 = vadd.f32 %v697_v33, %v628_v34  ;;  %v2016_v33 = vld [vmem:[%s3411_s3 + $0x38] sm:$0xf0]  ;;  %v3006_v34 = vmax.f32 %v2810_v58, %v520_v22 }
 0x18c   :  { %v732_v36 = vmax.f32 %v696_v35, %v698_v8 }
 0x18e   :  { %797 = vrot.lane.b32.xlu2 %v732_v36, %s2500_s16  ;;  %v2019_v36 = vor.u32 %v2273_v30, %v2016_v33 }
 0x190   :  { %v770_v43 = vpop.permute.xlu0 %769  ;;  %1168 = vmatpush.bf16.msrb.mxu2 %v2019_v36  ;;  %v2000_v36 = vld [vmem:[%s3411_s3 + $0x18] sm:$0xf0] }
 0x191   :  { %v812_v44 = vsel %vm62_vm3, %v768_v42, %v770_v43  ;;  %v658_v43 = vadd.f32 %v2822_v13, %v2824_v17 }
 0x192   :  { %v836_v45 = vmax.f32 %v2830_v28, %v812_v44 }
 0x193   :  { %v716_v47 = vmax.f32 %v2816_v1, %v658_v43 }
 0x194   :  { %v2975_v55 = vadd.f32 %v2964_v14, %v836_v45 }
 0x196   :  { %v864_v57 = vmax.f32 %v2975_v55, 0.0 }
 0x199   :  { %v562_v49 = vpop.f32.mrf.mxu1  ;;  %v772_v50 = vpop.permute.xlu1 %771 }
 0x19a   :  { %v813_v16 = vsel %vm62_vm3, %v772_v50, %v774_v46  ;;  %v493_v53 = vpop.f32.mrf.mxu0 }
 0x19b   :  { %v837_v28 = vmax.f32 %v2844_v51, %v813_v16  ;;  %v563_v9 = vadd.f32 %v562_v49, %v493_v53 }
 0x19d   :  { %v853_v56 = vadd.f32 %v2964_v14, %v837_v28 }
 0x19f   :  { %v865_v59 = vmax.f32 %v853_v56, 0.0  ;;  %v700_v60 = vpop.f32.mrf.mxu3  ;;  %v2006_v56 = vld [vmem:[%s3411_s3 + $0x20] sm:$0xf] }
 0x1a0   :  { %v631_v62 = vpop.f32.mrf.mxu2 }
 0x1a1   :  { %v891_v63 = vpack.c.bf16 %v865_v59, %v864_v57  ;;  %v564_v61 = vpop.f32.mrf.mxu1  ;;  %v701_v6 = vadd.f32 %v700_v60, %v631_v62  ;;  %v780_v48 = vpop.permute.xlu2 %779 }
 0x1a2   :  { %v495_v5 = vpop.f32.mrf.mxu0 }
 0x1a3   :  { %v565_v10 = vadd.f32 %v564_v61, %v495_v5  ;;  %1978 = vmatmul.msk.bf16.vlgmr.msrb.gmra.mxu1 %vm963_vm2, %v891_v63  ;;  %1983 = vmatmul.msk.bf16.vlgmr.msrb.gmra.mxu3 %vm963_vm2, %v891_v63  ;;  %v2271_v5 = vld [vmem:[%s3411_s3 + $0x24] sm:$0xf] }
 0x1a5   :  { %v2984_v51 = vmax.f32 %v563_v9, %v565_v10  ;;  %v2008_v9 = vld [vmem:[%s3411_s3 + $0x28] sm:$0xf0] }
 0x1a6   :  { %v2011_v10 = vor.u32 %v2271_v5, %v2008_v9  ;;  %v1990_v9 = vld [vmem:[%s3411_s3] sm:$0xf] }
 0x1a7   :  { %v702_v11 = vpop.f32.mrf.mxu3  ;;  %799 = vrot.lane.b32.xlu0 %v2984_v51, %s2500_s16 }
 0x1a8   :  { %v633_v12 = vpop.f32.mrf.mxu2  ;;  %1169 = vmatpush.bf16.msrb.mxu2 %v2011_v10  ;;  %v2268_v10 = vld [vmem:[%s3411_s3 + $0x4] sm:$0xf0] }
 0x1a9   :  { %v703_v18 = vadd.f32 %v702_v11, %v633_v12  ;;  %v567_v19 = vpop.f32.mrf.mxu1  ;;  %v776_v23 = vpop.permute.xlu0 %775 }
 0x1aa   :  { %v498_v20 = vpop.f32.mrf.mxu0 }
 0x1ab   :  { %v734_v21 = vmax.f32 %v701_v6, %v703_v18  ;;  %v568_v35 = vadd.f32 %v567_v19, %v498_v20  ;;  %v2048_v6 = vld [vmem:[%s3411_s3 + $0x100] sm:$0x33] }
 0x1ac   :  { %v1242_v19 = vunpack.c.l.b16 %v2048_v6  ;;  %v1243_v20 = vunpack.c.h.b16 %v2048_v6  ;;  %v1992_v6 = vld [vmem:[%s3411_s3 + $0x8] sm:$0xf0] }
 0x1ad   :  { %801 = vrot.lane.b32.xlu1 %v734_v21, %s2500_s16 }
 0x1ae   :  { %v1254_v22 = vpack.c.b16 %v1242_v19, %v1242_v19 }
 0x1af   :  { %v705_v0 = vpop.f32.mrf.mxu3 }
 0x1b0   :  { %v778_v2 = vpop.permute.xlu1 %777  ;;  %v636_v26 = vpop.f32.mrf.mxu2 }
 0x1b1   :  { %v814_v25 = vsel %vm62_vm3, %v776_v23, %v778_v2  ;;  %v569_v27 = vpop.f32.mrf.mxu1  ;;  %v706_v44 = vadd.f32 %v705_v0, %v636_v26  ;;  %v1255_v23 = vpack.c.b16 %v1243_v20, %v1243_v20  ;;  %v1270_v2 = vsel %vm979_vm4, %v1254_v22, 0  ;;  %v2067_v20 = vld [vmem:[%s3411_s3 + $0xd0] sm:$0xf]  ;;  %v2291_v22 = vld [vmem:[%s3411_s3 + $0xd4] sm:$0xf] }
 0x1b2   :  { %v838_v3 = vmax.f32 %v2855_v24, %v814_v25  ;;  %v500_v4 = vpop.f32.mrf.mxu0  ;;  %1277 = vmatpush.bf16.msra.mxu1 %v1270_v2  ;;  %v2069_v2 = vld [vmem:[%s3411_s3 + $0xd8] sm:$0xf0] }
 0x1b3   :  { %v570_v8 = vadd.f32 %v569_v27, %v500_v4  ;;  %v1273_v26 = vsel %vm979_vm4, %v1255_v23, 0  ;;  %v2270_v27 = vld [vmem:[%s3411_s3 + $0x14] sm:$0xf0] }
 0x1b4   :  { %v854_v37 = vadd.f32 %v2964_v14, %v838_v3  ;;  %1311 = vmatpush.bf16.msra.mxu3 %v1273_v26  ;;  %v2296_v4 = vld [vmem:[%s3411_s3 + $0xf4] sm:$0xf0] }
 0x1b5   :  { %v3009_v40 = vmax.f32 %v568_v35, %v570_v8  ;;  %763 = vrot.lane.b32.xlu1 %v3006_v34, %s2500_s16  ;;  %v2084_v33 = vor.u32 %v2296_v4, %v2083_v7  ;;  %v2269_v8 = vld [vmem:[%s3411_s3 + $0x14] sm:$0xf]  ;;  %v2059_v7 = vld [vmem:[%s3411_s3 + $0xc0] sm:$0xf]  ;;  %v2061_v4 = vld [vmem:[%s3411_s3 + $0xc8] sm:$0xf0] }
 0x1b6   :  { %v866_v24 = vmax.f32 %v854_v37, 0.0  ;;  %v2295_v37 = vld [vmem:[%s3411_s3 + $0xf4] sm:$0xf] }
 0x1b7   :  { %v707_v42 = vpop.f32.mrf.mxu3  ;;  %803 = vrot.lane.b32.xlu2 %v3009_v40, %s2500_s16  ;;  %1278 = vmatpush.bf16.msra.mxu1 %v2084_v33 }
 0x1b8   :  { %v3015_v41 = vpack.c.bf16 %v866_v24, %v865_v59  ;;  %v638_v58 = vpop.f32.mrf.mxu2  ;;  %v786_v13 = vpop.permute.xlu2 %785 }
 0x1b9   :  { %v708_v45 = vadd.f32 %v707_v42, %v638_v58  ;;  %v2003_v42 = vor.u32 %v2269_v8, %v2000_v36  ;;  %v2051_v8 = vld [vmem:[%s3411_s3 + $0xb0] sm:$0xf]  ;;  %v2288_v36 = vld [vmem:[%s3411_s3 + $0xb4] sm:$0xf0] }
 0x1bb   :  { %v736_v46 = vmax.f32 %v706_v44, %v708_v45  ;;  %1170 = vmatpush.bf16.msrb.mxu2 %v2003_v42  ;;  %v2053_v42 = vld [vmem:[%s3411_s3 + $0xb8] sm:$0xf0] }
 0x1bd   :  { %805 = vrot.lane.b32.xlu0 %v736_v46, %s2500_s16 }
 0x1bf   :  { %765 = vrot.lane.b32.xlu2 %v716_v47, %s2500_s16  ;;  %v2075_v47 = vld [vmem:[%s3411_s3 + $0xe0] sm:$0xf] }
 0x1c0   :  { %v782_v49 = vpop.permute.xlu0 %781 }
 0x1c1   :  { %v815_v50 = vsel %vm62_vm3, %v780_v48, %v782_v49  ;;  %v2294_v48 = vld [vmem:[%s3411_s3 + $0xe4] sm:$0xf0]  ;;  %v2293_v49 = vld [vmem:[%s3411_s3 + $0xe4] sm:$0xf] }
 0x1c2   :  { %v839_v52 = vmax.f32 %v2866_v38, %v815_v50  ;;  %v2272_v38 = vld [vmem:[%s3411_s3 + $0x24] sm:$0xf0] }
 0x1c3   :  { %v2007_v60 = vor.u32 %v2272_v38, %v2006_v56 }
 0x1c4   :  { %v855_v16 = vadd.f32 %v2964_v14, %v839_v52  ;;  %v2076_v52 = vor.u32 %v2294_v48, %v2075_v47 }
 0x1c5   :  { %1135 = vmatpush.bf16.msrb.mxu0 %v2007_v60 }
 0x1c6   :  { %v867_v53 = vmax.f32 %v855_v16, 0.0  ;;  %v2077_v16 = vld [vmem:[%s3411_s3 + $0xe8] sm:$0xf0]  ;;  %1279 = vmatpush.bf16.msra.mxu1 %v2076_v52 }
 0x1c8   :  { %v892_v28 = vpack.c.bf16 %v867_v53, %v866_v24 }
 0x1c9   :  { %v784_v17 = vpop.permute.xlu1 %783 }
 0x1ca   :  { %1979 = vmatmul.msk.bf16.gmra.mxu1 %vm963_vm2, %v892_v28  ;;  %1984 = vmatmul.msk.bf16.gmra.mxu3 %vm963_vm2, %v892_v28  ;;  %v816_v1 = vsel %vm62_vm3, %v784_v17, %v786_v13  ;;  %v2080_v28 = vor.u32 %v2293_v49, %v2077_v16 }
 0x1cb   :  { %v840_v59 = vmax.f32 %v2877_v54, %v816_v1 }
 0x1cd   :  { %v856_v62 = vadd.f32 %v2964_v14, %v840_v59 }
 0x1cf   :  { %v868_v63 = vmax.f32 %v856_v62, 0.0 }
 0x1d1   :  { %v3036_v61 = vpack.c.bf16 %v868_v63, %v867_v53  ;;  %v792_v29 = vpop.permute.xlu2 %791 }
 0x1d9   :  { %v788_v11 = vpop.permute.xlu0 %787 }
 0x1e0   :  { %v790_v12 = vpop.permute.xlu1 %789 }
 0x1e1   :  { %v817_v54 = vsel %vm62_vm3, %v788_v11, %v790_v12  ;;  %v2267_v11 = vld [vmem:[%s3411_s3 + $0x4] sm:$0xf] }
 0x1e2   :  { %v841_v18 = vmax.f32 %v2888_v15, %v817_v54  ;;  %v1998_v15 = vld [vmem:[%s3411_s3 + $0x10] sm:$0xf]  ;;  %v1991_v54 = vor.u32 %v2268_v10, %v1990_v9 }
 0x1e3   :  { %v1999_v3 = vor.u32 %v2270_v27, %v1998_v15  ;;  %v2072_v15 = vor.u32 %v2291_v22, %v2069_v2 }
 0x1e4   :  { %v857_v21 = vadd.f32 %v2964_v14, %v841_v18  ;;  %v1995_v18 = vor.u32 %v2267_v11, %v1992_v6 }
 0x1e5   :  { %1136 = vmatpush.bf16.msrb.mxu0 %v1999_v3  ;;  %v2289_v3 = vld [vmem:[%s3411_s3 + $0xc4] sm:$0xf] }
 0x1e6   :  { %v869_v0 = vmax.f32 %v857_v21, 0.0  ;;  %v2292_v21 = vld [vmem:[%s3411_s3 + $0xd4] sm:$0xf0]  ;;  %1171 = vmatpush.bf16.msrb.mxu2 %v1995_v18 }
 0x1e8   :  { %v893_v25 = vpack.c.bf16 %v869_v0, %v868_v63  ;;  %v798_v45 = vpop.permute.xlu2 %797 }
 0x1e9   :  { %1137 = vmatpush.bf16.msrb.mxu0 %v1991_v54 }
 0x1ea   :  { %1980 = vmatmul.msk.bf16.gmra.mxu1 %vm963_vm2, %v893_v25  ;;  %1985 = vmatmul.msk.bf16.gmra.mxu3 %vm963_vm2, %v893_v25 }
 0x1f0   :  { %v794_v30 = vpop.permute.xlu0 %793 }
 0x1f1   :  { %v818_v31 = vsel %vm62_vm3, %v792_v29, %v794_v30  ;;  %v2290_v29 = vld [vmem:[%s3411_s3 + $0xc4] sm:$0xf0] }
 0x1f2   :  { %v842_v35 = vmax.f32 %v2903_v39, %v818_v31  ;;  %v2085_v39 = vld [vmem:[%s3411_s3 + $0xf8] sm:$0xf0]  ;;  %v2060_v30 = vor.u32 %v2290_v29, %v2059_v7  ;;  %v2064_v31 = vor.u32 %v2289_v3, %v2061_v4 }
 0x1f3   :  { %v2088_v58 = vor.u32 %v2295_v37, %v2085_v39  ;;  %v2052_v37 = vor.u32 %v2288_v36, %v2051_v8 }
 0x1f4   :  { %v858_v24 = vadd.f32 %v2964_v14, %v842_v35 }
 0x1f5   :  { %1312 = vmatpush.bf16.msra.mxu3 %v2088_v58 }
 0x1f6   :  { %v870_v43 = vmax.f32 %v858_v24, 0.0  ;;  %v2287_v24 = vld [vmem:[%s3411_s3 + $0xb4] sm:$0xf]  ;;  %s2515_s3 = smov 58  }
 0x1f7   :  { %v2056_v39 = vor.u32 %v2287_v24, %v2053_v42 }
 0x1f8   :  { %v3081_v44 = vpack.c.bf16 %v870_v43, %v869_v0  ;;  %v2068_v0 = vor.u32 %v2292_v21, %v2067_v20 }
 0x1f9   :  { %v796_v46 = vpop.permute.xlu1 %795  ;;  %1313 = vmatpush.bf16.msra.mxu3 %v2080_v28 }
 0x1fa   :  { %v819_v50 = vsel %vm62_vm3, %v796_v46, %v798_v45  ;;  %1280 = vmatpush.bf16.msra.mxu1 %v2068_v0 }
 0x1fb   :  { %v843_v53 = vmax.f32 %v2949_v32, %v819_v50 }
 0x1fd   :  { %v3098_v13 = vadd.f32 %v2964_v14, %v843_v53  ;;  %1314 = vmatpush.bf16.msra.mxu3 %v2072_v15 }
 0x1fe   :  { %1281 = vmatpush.bf16.msra.mxu1 %v2060_v30 }
 0x1ff   :  { %v871_v17 = vmax.f32 %v3098_v13, 0.0 }
 0x201   :  { %v894_v1 = vpack.c.bf16 %v871_v17, %v870_v43  ;;  %v572_v56 = vpop.f32.mrf.mxu1  ;;  %1315 = vmatpush.bf16.msra.mxu3 %v2064_v31 }
 0x202   :  { %v503_v38 = vpop.f32.mrf.mxu0  ;;  %1282 = vmatpush.bf16.msra.mxu1 %v2052_v37 }
 0x203   :  { %1981 = vmatmul.msk.bf16.gmra.mxu1 %vm963_vm2, %v894_v1  ;;  %1986 = vmatmul.msk.bf16.gmra.mxu3 %vm963_vm2, %v894_v1  ;;  %v573_v63 = vadd.f32 %v572_v56, %v503_v38 }
 0x205   :  { %1316 = vmatpush.bf16.msra.mxu3 %v2056_v39 }
 0x207   :  { %v710_v59 = vpop.f32.mrf.mxu3 }
 0x208   :  { %v641_v60 = vpop.f32.mrf.mxu2 }
 0x209   :  { %v574_v32 = vpop.f32.mrf.mxu1  ;;  %v711_v26 = vadd.f32 %v710_v59, %v641_v60 }
 0x20a   :  { %v505_v62 = vpop.f32.mrf.mxu0 }
 0x20b   :  { %v575_v5 = vadd.f32 %v574_v32, %v505_v62 }
 0x20d   :  { %v3114_v12 = vmax.f32 %v573_v63, %v575_v5 }
 0x20f   :  { %v712_v19 = vpop.f32.mrf.mxu3  ;;  %807 = vrot.lane.b32.xlu0 %v3114_v12, %s2500_s16 }
 0x210   :  { %v643_v23 = vpop.f32.mrf.mxu2 }
 0x211   :  { %v713_v25 = vadd.f32 %v712_v19, %v643_v23  ;;  %v804_v33 = vpop.permute.xlu2 %803 }
 0x213   :  { %v738_v27 = vmax.f32 %v711_v26, %v713_v25 }
 0x215   :  { %809 = vrot.lane.b32.xlu1 %v738_v27, %s2500_s16 }
 0x219   :  { %v800_v58 = vpop.permute.xlu0 %799  ;;  %v766_v43 = vpop.permute.xlu2 %765 }
 0x21f   :  { %v802_v35 = vpop.permute.xlu1 %801 }
 0x220   :  { %v820_v48 = vsel %vm62_vm3, %v800_v58, %v802_v35  ;;  %v995_v55 = vpop.f32.mrf.mxu1 }
 0x221   :  { %v844_v50 = vmax.f32 %v2984_v51, %v820_v48 }
 0x223   :  { %v860_v1 = vadd.f32 %v2964_v14, %v844_v50 }
 0x225   :  { %v872_v38 = vmax.f32 %v860_v1, 0.0 }
 0x227   :  { %v764_v45 = vpop.permute.xlu1 %763 }
 0x228   :  { %v811_v46 = vsel %vm62_vm3, %v764_v45, %v766_v43 }
 0x229   :  { %v835_v47 = vmax.f32 %v3006_v34, %v811_v46 }
 0x22b   :  { %v851_v49 = vadd.f32 %v2964_v14, %v835_v47 }
 0x22d   :  { %v863_v52 = vmax.f32 %v851_v49, 0.0 }
 0x22f   :  { %v875_v16 = vpack.c.bf16 %v864_v57, %v863_v52  ;;  %v806_v53 = vpop.permute.xlu0 %805  ;;  %v879_v57 = vpack.c.bf16 %v872_v38, %v871_v17 }
 0x230   :  { %v821_v28 = vsel %vm62_vm3, %v804_v33, %v806_v53 }
 0x231   :  { %v845_v56 = vmax.f32 %v3009_v40, %v821_v28  ;;  %2028 = vmatmul.msk.bf16.vlgmr.msrb.gmra.mxu0 %vm963_vm2, %v875_v16  ;;  %2033 = vmatmul.msk.bf16.vlgmr.msrb.gmra.mxu2 %vm963_vm2, %v875_v16  ;;  %v3201_v40 = vpop.f32.mrf.mxu3 }
 0x233   :  { %v861_v34 = vadd.f32 %v2964_v14, %v845_v56 }
 0x235   :  { %v873_v59 = vmax.f32 %v861_v34, 0.0 }
 0x237   :  { %v895_v51 = vpack.c.bf16 %v873_v59, %v872_v38 }
 0x239   :  { %1982 = vmatmul.msk.bf16.gmra.mxu1 %vm963_vm2, %v895_v51  ;;  %1987 = vmatmul.msk.bf16.gmra.mxu3 %vm963_vm2, %v895_v51 }
 0x241   :  { %2029 = vmatmul.msk.bf16.gmra.mxu0 %vm963_vm2, %v3015_v41  ;;  %2034 = vmatmul.msk.bf16.gmra.mxu2 %vm963_vm2, %v3015_v41 }
 0x249   :  { %2089 = vmatmul.msk.bf16.vlgmr.msra.gmra.mxu1 %vm963_vm2, %v3015_v41  ;;  %2094 = vmatmul.msk.bf16.vlgmr.msra.gmra.mxu3 %vm963_vm2, %v3015_v41  ;;  %v997_v41 = vpop.f32.mrf.mxu1 }
 0x251   :  { %2030 = vmatmul.msk.bf16.gmra.mxu0 %vm963_vm2, %v3036_v61  ;;  %2035 = vmatmul.msk.bf16.gmra.mxu2 %vm963_vm2, %v3036_v61  ;;  %v1000_v60 = vpop.f32.mrf.mxu1 }
 0x259   :  { %2090 = vmatmul.msk.bf16.gmra.mxu1 %vm963_vm2, %v3036_v61  ;;  %2095 = vmatmul.msk.bf16.gmra.mxu3 %vm963_vm2, %v3036_v61  ;;  %v1031_v61 = vpop.f32.mrf.mxu3  ;;  %v1002_v17 = vpop.f32.mrf.mxu1 }
 0x261   :  { %2031 = vmatmul.msk.bf16.gmra.mxu0 %vm963_vm2, %v3081_v44  ;;  %2036 = vmatmul.msk.bf16.gmra.mxu2 %vm963_vm2, %v3081_v44  ;;  %v1034_v32 = vpop.f32.mrf.mxu3 }
 0x267   :  { %v1005_v54 = vpop.f32.mrf.mxu1 }
 0x269   :  { %2091 = vmatmul.msk.bf16.gmra.mxu1 %vm963_vm2, %v3081_v44  ;;  %2096 = vmatmul.msk.bf16.gmra.mxu3 %vm963_vm2, %v3081_v44  ;;  %v1036_v11 = vpop.f32.mrf.mxu3 }
 0x26f   :  { %v1007_v18 = vpop.f32.mrf.mxu1 }
 0x271   :  { %2032 = vmatmul.msk.bf16.gmra.mxu0 %vm963_vm2, %v879_v57  ;;  %2037 = vmatmul.msk.bf16.gmra.mxu2 %vm963_vm2, %v879_v57  ;;  %v3210_v6 = vpop.f32.mrf.mxu3 }
 0x279   :  { %2092 = vmatmul.msk.bf16.gmra.mxu1 %vm963_vm2, %v879_v57  ;;  %2097 = vmatmul.msk.bf16.gmra.mxu3 %vm963_vm2, %v879_v57  ;;  %v3212_v19 = vpop.f32.mrf.mxu3 }
 0x280   :  { %v3214_v20 = vpop.f32.mrf.mxu1 }
 0x281   :  { %v808_v62 = vpop.permute.xlu0 %807 }
 0x286   :  { %v3216_v21 = vpop.f32.mrf.mxu3 }
 0x287   :  { %v810_v44 = vpop.permute.xlu1 %809 }
 0x288   :  { %v822_v63 = vsel %vm62_vm3, %v808_v62, %v810_v44  ;;  %vm1485_vm3 = vcmask 1042432  }
 0x289   :  { %v846_v13 = vmax.f32 %v3114_v12, %v822_v63  ;;  %v3218_v12 = vpop.f32.mrf.mxu1 }
 0x28b   :  { %v862_v5 = vadd.f32 %v2964_v14, %v846_v13 }
 0x28d   :  { %v874_v9 = vmax.f32 %v862_v5, 0.0 }
 0x28e   :  { %v3220_v14 = vpop.f32.mrf.mxu3 }
 0x28f   :  { %v1198_v10 = vpack.c.bf16 %v874_v9, %v873_v59 }
 0x291   :  { %2093 = vmatmul.msk.bf16.gmra.mxu1 %vm963_vm2, %v1198_v10  ;;  %2098 = vmatmul.msk.bf16.gmra.mxu3 %vm963_vm2, %v1198_v10 }
 0x2ae   :  { %v1139_v22 = vpop.f32.mrf.mxu0 }
 0x2af   :  { %v1140_v3 = vadd.f32 %v1139_v22, %v995_v55 }
 0x2b4   :  { %v1173_v0 = vpop.f32.mrf.mxu2 }
 0x2b5   :  { %v1174_v56 = vadd.f32 %v1173_v0, %v3201_v40 }
 0x2b6   :  { %v3222_v23 = vpop.f32.mrf.mxu1  ;;  %v1141_v26 = vpop.f32.mrf.mxu0 }
 0x2b7   :  { %v1142_v4 = vadd.f32 %v1141_v26, %v997_v41 }
 0x2bc   :  { %v3224_v2 = vpop.f32.mrf.mxu3  ;;  %v1175_v15 = vpop.f32.mrf.mxu2 }
 0x2bd   :  { %v1176_v16 = vadd.f32 %v1175_v15, %v1031_v61 }
 0x2be   :  { %v3226_v25 = vpop.f32.mrf.mxu1  ;;  %v1144_v29 = vpop.f32.mrf.mxu0 }
 0x2bf   :  { %v1145_v45 = vadd.f32 %v1144_v29, %v1000_v60 }
 0x2c4   :  { %v3228_v27 = vpop.f32.mrf.mxu3  ;;  %v1178_v31 = vpop.f32.mrf.mxu2 }
 0x2c5   :  { %v1179_v53 = vadd.f32 %v1178_v31, %v1034_v32 }
 0x2c6   :  { %v1284_v7 = vpop.f32.mrf.mxu1  ;;  %v1146_v37 = vpop.f32.mrf.mxu0 }
 0x2c7   :  { %v1343_v35 = vadd.f32 %v1284_v7, %v1140_v3  ;;  %v1147_v46 = vadd.f32 %v1146_v37, %v1002_v17 }
 0x2cc   :  { %v1318_v30 = vpop.f32.mrf.mxu3  ;;  %v1180_v39 = vpop.f32.mrf.mxu2 }
 0x2cd   :  { %v1181_v28 = vadd.f32 %v1180_v39, %v1036_v11  ;;  %v1344_v57 = vadd.f32 %v1318_v30, %v1174_v56 }
 0x2ce   :  { %v1286_v33 = vpop.f32.mrf.mxu1  ;;  %v1149_v58 = vpop.f32.mrf.mxu0 }
 0x2cf   :  { %v1345_v8 = vadd.f32 %v1286_v33, %v1142_v4  ;;  %v1150_v62 = vadd.f32 %v1149_v58, %v1005_v54  ;;  %v2107_v33 = vld [vmem:[%s3413_s5 + $0x44] sm:$0x7] }
 0x2d1   :  { %v3230_v36 = vmax.f32 %v1343_v35, %v1345_v8  ;;  %v1442_v35 = vld [vmem:[%s3413_s5 + $0x20] sm:$0x7]  ;;  %v1471_v8 = vunpack.c.l.b16 %v2107_v33  ;;  %v2312_v33 = vld [vmem:[%s3413_s5 + $0x84] sm:$0xff] }
 0x2d2   :  { %v1519_v37 = vunpack.c.l.b16 %v1442_v35  ;;  %v2311_v35 = vld [vmem:[%s3413_s5 + $0x7c] sm:$0xff] }
 0x2d3   :  { %1383 = vrot.lane.b32.xlu1 %v3230_v36, %s2515_s3 }
 0x2d4   :  { %v1320_v24 = vpop.f32.mrf.mxu3  ;;  %v1183_v52 = vpop.f32.mrf.mxu2  ;;  %v1524_v39 = vpack.c.b16 %v1519_v37, %v1519_v37 }
 0x2d5   :  { %v1346_v34 = vadd.f32 %v1320_v24, %v1176_v16  ;;  %v1184_v9 = vadd.f32 %v1183_v52, %v3210_v6 }
 0x2d6   :  { %v1289_v42 = vpop.f32.mrf.mxu1  ;;  %v1151_v51 = vpop.f32.mrf.mxu0 }
 0x2d7   :  { %v1347_v48 = vadd.f32 %v1289_v42, %v1145_v45  ;;  %v1364_v60 = vmax.f32 %v1344_v57, %v1346_v34  ;;  %v1152_v44 = vadd.f32 %v1151_v51, %v1007_v18  ;;  %v1476_v42 = vpack.c.b16 %v1471_v8, %v1471_v8 }
 0x2d9   :  { %v1487_v45 = vsel %vm1485_vm3, %v1476_v42, 0  ;;  %v2202_v42 = vld [vmem:[%s3413_s5 + $0xb0] sm:$0x7] }
 0x2da   :  { %1492 = vmatpush.bf16.msra.mxu0 %v1487_v45 }
 0x2dc   :  { %v1323_v43 = vpop.f32.mrf.mxu3  ;;  %v1185_v61 = vpop.f32.mrf.mxu2 }
 0x2dd   :  { %v1348_v38 = vadd.f32 %v1323_v43, %v1179_v53  ;;  %v1186_v10 = vadd.f32 %v1185_v61, %v3212_v19  ;;  %v2299_v61 = vld [vmem:[%s3413_s5 + $0x10] sm:$0xff] }
 0x2de   :  { %v1291_v47 = vpop.f32.mrf.mxu1  ;;  %v1154_v40 = vpop.f32.mrf.mxu0 }
 0x2df   :  { %v1349_v49 = vadd.f32 %v1291_v47, %v1147_v46  ;;  %v1155_v29 = vadd.f32 %v1154_v40, %v3214_v20  ;;  %v1533_v46 = vsel %vm1485_vm3, %v1524_v39, 0  ;;  %v1692_v39 = vunpack.c.l.b16 %v2202_v42 }
 0x2e0   :  { %1538 = vmatpush.bf16.msra.mxu2 %v1533_v46 }
 0x2e1   :  { %v3234_v50 = vmax.f32 %v1347_v48, %v1349_v49  ;;  %v1697_v45 = vpack.c.b16 %v1692_v39, %v1692_v39 }
 0x2e3   :  { %1387 = vrot.lane.b32.xlu2 %v3234_v50, %s2515_s3 }
 0x2e4   :  { %v1325_v1 = vpop.f32.mrf.mxu3  ;;  %v1188_v26 = vpop.f32.mrf.mxu2 }
 0x2e5   :  { %v1350_v59 = vadd.f32 %v1325_v1, %v1181_v28  ;;  %v1189_v20 = vadd.f32 %v1188_v26, %v3216_v21  ;;  %v2304_v21 = vld [vmem:[%s3413_s5 + $0x3c] sm:$0xff] }
 0x2e6   :  { %v1294_v55 = vpop.f32.mrf.mxu1  ;;  %v1156_v18 = vpop.f32.mrf.mxu0  ;;  %1493 = vmatpush.bf16.msra.mxu0 %v2304_v21  ;;  %v2315_v21 = vld [vmem:[%s3413_s5 + $0xa0] sm:$0xff] }
 0x2e7   :  { %v1366_v41 = vmax.f32 %v1348_v38, %v1350_v59  ;;  %v1351_v13 = vadd.f32 %v1294_v55, %v1150_v62  ;;  %v1157_v30 = vadd.f32 %v1156_v18, %v3218_v12  ;;  %v2302_v62 = vld [vmem:[%s3413_s5 + $0x2c] sm:$0xff] }
 0x2e9   :  { %1389 = vrot.lane.b32.xlu0 %v1366_v41, %s2515_s3 }
 0x2eb   :  { %1385 = vrot.lane.b32.xlu2 %v1364_v60, %s2515_s3 }
 0x2ec   :  { %v1328_v32 = vpop.f32.mrf.mxu3  ;;  %v1190_v4 = vpop.f32.mrf.mxu2 }
 0x2ed   :  { %v1352_v22 = vadd.f32 %v1328_v32, %v1184_v9  ;;  %v1191_v12 = vadd.f32 %v1190_v4, %v3220_v14  ;;  %v2303_v32 = vld [vmem:[%s3413_s5 + $0x34] sm:$0xff] }
 0x2ee   :  { %v1296_v63 = vpop.f32.mrf.mxu1  ;;  %v1159_v14 = vpop.f32.mrf.mxu0  ;;  %1494 = vmatpush.bf16.msra.mxu0 %v2303_v32 }
 0x2ef   :  { %v1353_v17 = vadd.f32 %v1296_v63, %v1152_v44  ;;  %v1160_v53 = vadd.f32 %v1159_v14, %v3222_v23  ;;  %v2300_v23 = vld [vmem:[%s3413_s5 + $0x18] sm:$0xff]  ;;  %v2150_v63 = vld [vmem:[%s3413_s5 + $0x68] sm:$0x7] }
 0x2f0   :  { %1539 = vmatpush.bf16.msra.mxu2 %v2300_v23 }
 0x2f1   :  { %v3241_v5 = vmax.f32 %v1351_v13, %v1353_v17  ;;  %v1576_v13 = vunpack.c.l.b16 %v2150_v63  ;;  %v2301_v17 = vld [vmem:[%s3413_s5 + $0x24] sm:$0xff] }
 0x2f2   :  { %1495 = vmatpush.bf16.msra.mxu0 %v2302_v62 }
 0x2f3   :  { %1391 = vrot.lane.b32.xlu0 %v3241_v5, %s2515_s3  ;;  %v1581_v40 = vpack.c.b16 %v1576_v13, %v1576_v13 }
 0x2f4   :  { %v1330_v11 = vpop.f32.mrf.mxu3  ;;  %v1193_v48 = vpop.f32.mrf.mxu2  ;;  %1540 = vmatpush.bf16.msra.mxu2 %v2299_v61 }
 0x2f5   :  { %v1354_v0 = vadd.f32 %v1330_v11, %v1186_v10  ;;  %v1194_v51 = vadd.f32 %v1193_v48, %v3224_v2  ;;  %v2298_v2 = vld [vmem:[%s3413_s5 + $0x8] sm:$0xff]  ;;  %v1590_v9 = vsel %vm1485_vm3, %v1581_v40, 0  ;;  %v3305_v11 = vld [vmem:[%s3412_s4] ss:$0 sm:$0xff] }
 0x2f6   :  { %v1299_v15 = vpop.f32.mrf.mxu1  ;;  %v1161_v52 = vpop.f32.mrf.mxu0  ;;  %1496 = vmatpush.bf16.msra.mxu0 %v2301_v17  ;;  %v2322_v17 = vld [vmem:[%s3414_s7 + $0x28] sm:$0xff] }
 0x2f7   :  { %v1368_v54 = vmax.f32 %v1352_v22, %v1354_v0  ;;  %v1355_v3 = vadd.f32 %v1299_v15, %v1155_v29  ;;  %v1162_v28 = vadd.f32 %v1161_v52, %v3226_v25  ;;  %v2308_v0 = vld [vmem:[%s3413_s5 + $0x60] sm:$0xff] }
 0x2f8   :  { %1541 = vmatpush.bf16.msra.mxu2 %v2298_v2 }
 0x2f9   :  { %1393 = vrot.lane.b32.xlu1 %v1368_v54, %s2515_s3  ;;  %v2307_v54 = vld [vmem:[%s3413_s5 + $0x58] sm:$0xff] }
 0x2fa   :  { %1595 = vmatpush.bf16.msrb.mxu0 %v1590_v9  ;;  %v2320_v9 = vld [vmem:[%s3414_s7 + $0x18] sm:$0xff] }
 0x2fc   :  { %v1333_v7 = vpop.f32.mrf.mxu3  ;;  %v1195_v38 = vpop.f32.mrf.mxu2 }
 0x2fd   :  { %v1356_v58 = vadd.f32 %v1333_v7, %v1189_v20  ;;  %v1196_v55 = vadd.f32 %v1195_v38, %v3228_v27  ;;  %v2297_v27 = vld [vmem:[%s3413_s5] sm:$0xff] }
 0x2fe   :  { %v1301_v6 = vpop.f32.mrf.mxu1  ;;  %1542 = vmatpush.bf16.msra.mxu2 %v2297_v27  ;;  %1596 = vmatpush.bf16.msrb.mxu0 %v2308_v0  ;;  %v2318_v0 = vld [vmem:[%s3414_s7 + $0x8] sm:$0xff] }
 0x2ff   :  { %v1357_v19 = vadd.f32 %v1301_v6, %v1157_v30  ;;  %v2306_v30 = vld [vmem:[%s3413_s5 + $0x50] sm:$0xff]  ;;  %v2176_v6 = vld [vmem:[%s3413_s5 + $0x8c] sm:$0x7] }
 0x301   :  { %v3250_v31 = vmax.f32 %v1355_v3, %v1357_v19  ;;  %v2305_v19 = vld [vmem:[%s3413_s5 + $0x48] sm:$0xff] }
 0x302   :  { %1597 = vmatpush.bf16.msrb.mxu0 %v2307_v54 }
 0x303   :  { %1395 = vrot.lane.b32.xlu2 %v3250_v31, %s2515_s3 }
 0x304   :  { %v1335_v24 = vpop.f32.mrf.mxu3 }
 0x305   :  { %v1358_v43 = vadd.f32 %v1335_v24, %v1191_v12  ;;  %v2310_v12 = vld [vmem:[%s3413_s5 + $0x74] sm:$0xff] }
 0x306   :  { %1598 = vmatpush.bf16.msrb.mxu0 %v2306_v30 }
 0x307   :  { %v1370_v47 = vmax.f32 %v1356_v58, %v1358_v43  ;;  %v2309_v43 = vld [vmem:[%s3413_s5 + $0x6c] sm:$0xff] }
 0x309   :  { %1397 = vrot.lane.b32.xlu0 %v1370_v47, %s2515_s3  ;;  %v2316_v47 = vld [vmem:[%s3413_s5 + $0xa8] sm:$0xff] }
 0x30a   :  { %1599 = vmatpush.bf16.msrb.mxu0 %v2305_v19 }
 0x30e   :  { %v1304_v49 = vpop.f32.mrf.mxu1 }
 0x30f   :  { %v1359_v56 = vadd.f32 %v1304_v49, %v1160_v53  ;;  %v2314_v53 = vld [vmem:[%s3413_s5 + $0x98] sm:$0xff] }
 0x314   :  { %v1338_v16 = vpop.f32.mrf.mxu3 }
 0x315   :  { %v1360_v41 = vadd.f32 %v1338_v16, %v1194_v51 }
 0x316   :  { %v1306_v1 = vpop.f32.mrf.mxu1 }
 0x317   :  { %v1361_v34 = vadd.f32 %v1306_v1, %v1162_v28 }
 0x319   :  { %v3270_v59 = vmax.f32 %v1359_v56, %v1361_v34  ;;  %v2313_v56 = vld [vmem:[%s3413_s5 + $0x90] sm:$0xff] }
 0x31b   :  { %1399 = vrot.lane.b32.xlu1 %v3270_v59, %s2515_s3 }
 0x31c   :  { %v1340_v57 = vpop.f32.mrf.mxu3 }
 0x31d   :  { %v1362_v60 = vadd.f32 %v1340_v57, %v1196_v55 }
 0x31f   :  { %v1372_v25 = vmax.f32 %v1360_v41, %v1362_v60 }
 0x321   :  { %1401 = vrot.lane.b32.xlu2 %v1372_v25, %s2515_s3 }
 0x33d   :  { %v1388_v44 = vpop.permute.xlu2 %1387 }
 0x345   :  { %v1386_v10 = vpop.permute.xlu2 %1385  ;;  %v1384_v22 = vpop.permute.xlu1 %1383 }
 0x346   :  { %v1404_v26 = vsel %vm1403_vm5, %v1384_v22, %v1386_v10 }
 0x347   :  { %v1414_v15 = vmax.f32 %v3230_v36, %v1404_v26  ;;  %v1634_v36 = vunpack.c.l.b16 %v2176_v6 }
 0x349   :  { %v1423_v18 = vadd.f32 %v3305_v11, %v1414_v15  ;;  %v1639_v3 = vpack.c.b16 %v1634_v36, %v1634_v36  ;;  %v2317_v15 = vld [vmem:[%s3414_s7] sm:$0xff] }
 0x34b   :  { %v1428_v7 = vmax.f32 %v1423_v18, 0.0  ;;  %v1648_v4 = vsel %vm1485_vm3, %v1639_v3, 0  ;;  %v2493_v3 = vld [vmem:[%s3415_s6] ss:$0 sm:$0xff] }
 0x34c   :  { %1653 = vmatpush.bf16.msrb.mxu2 %v1648_v4 }
 0x34d   :  { %v1433_v29 = vpack.c.bf16 %v1428_v7, %v1428_v7 }
 0x34f   :  { %2141 = vmatmul.msk.bf16.vlgmr.msra.gmra.mxu2 %vm1481_vm6, %v1433_v29 }
 0x350   :  { %1654 = vmatpush.bf16.msrb.mxu2 %v2312_v33 }
 0x354   :  { %1655 = vmatpush.bf16.msrb.mxu2 %v2311_v35 }
 0x358   :  { %1656 = vmatpush.bf16.msrb.mxu2 %v2310_v12 }
 0x35b   :  { %v1390_v8 = vpop.permute.xlu0 %1389 }
 0x35c   :  { %v1405_v37 = vsel %vm1403_vm5, %v1388_v44, %v1390_v8  ;;  %1657 = vmatpush.bf16.msrb.mxu2 %v2309_v43 }
 0x35d   :  { %v1415_v20 = vmax.f32 %v3234_v50, %v1405_v37  ;;  %v1706_v50 = vsel %vm1485_vm3, %v1697_v45, 0  ;;  %v1396_v51 = vpop.permute.xlu2 %1395 }
 0x35f   :  { %v1424_v24 = vadd.f32 %v3305_v11, %v1415_v20  ;;  %v2494_v20 = vld [vmem:[%s3416_s8] ss:$0 sm:$0xff] }
 0x361   :  { %v1429_v58 = vmax.f32 %v1424_v24, 0.0 }
 0x363   :  { %v1443_v46 = vpack.c.bf16 %v1429_v58, %v1429_v58 }
 0x365   :  { %2124 = vmatmul.msk.bf16.vlgmr.msra.gmra.mxu0 %vm1481_vm6, %v1443_v46  ;;  %v1392_v14 = vpop.permute.xlu0 %1391 }
 0x366   :  { %1711 = vmatpush.bf16.msra.mxu0 %v1706_v50 }
 0x36a   :  { %1712 = vmatpush.bf16.msra.mxu0 %v2316_v47 }
 0x36b   :  { %v1394_v48 = vpop.permute.xlu1 %1393 }
 0x36c   :  { %v1406_v49 = vsel %vm1403_vm5, %v1392_v14, %v1394_v48 }
 0x36d   :  { %v1416_v52 = vmax.f32 %v3241_v5, %v1406_v49  ;;  %v1743_v5 = vld [vmem:[%s3414_s7 + $0x38] sm:$0xf] }
 0x36e   :  { %1713 = vmatpush.bf16.msra.mxu0 %v2315_v21  ;;  %v1777_v34 = vunpack.c.l.b16 %v1743_v5 }
 0x36f   :  { %v1425_v16 = vadd.f32 %v3305_v11, %v1416_v52 }
 0x370   :  { %v1785_v38 = vpack.c.b16 %v1777_v34, %v1777_v34 }
 0x371   :  { %v1430_v28 = vmax.f32 %v1425_v16, 0.0 }
 0x372   :  { %1714 = vmatpush.bf16.msra.mxu0 %v2314_v53  ;;  %v1798_v41 = vsel %vm1796_vm7, %v1785_v38, 0 }
 0x373   :  { %v1548_v1 = vpack.c.bf16 %v1430_v28, %v1430_v28  ;;  %1800 = vmatpush.bf16.msrb.mxu1 %v1798_v41 }
 0x375   :  { %2167 = vmatmul.msk.bf16.vlgmr.msrb.gmra.mxu0 %vm1481_vm6, %v1548_v1 }
 0x376   :  { %1715 = vmatpush.bf16.msra.mxu0 %v2313_v56 }
 0x37b   :  { %v1398_v55 = vpop.permute.xlu0 %1397  ;;  %v1402_v2 = vpop.permute.xlu2 %1401 }
 0x37c   :  { %v1407_v57 = vsel %vm1403_vm5, %v1396_v51, %v1398_v55 }
 0x37d   :  { %v1417_v60 = vmax.f32 %v3250_v31, %v1407_v57  ;;  %v2323_v31 = vld [vmem:[%s3414_s7 + $0x30] sm:$0xff] }
 0x37e   :  { %1801 = vmatpush.bf16.msrb.mxu1 %v2323_v31 }
 0x37f   :  { %v1426_v23 = vadd.f32 %v3305_v11, %v1417_v60 }
 0x381   :  { %v1431_v25 = vmax.f32 %v1426_v23, 0.0 }
 0x382   :  { %1802 = vmatpush.bf16.msrb.mxu1 %v2322_v17 }
 0x383   :  { %v1606_v61 = vpack.c.bf16 %v1431_v25, %v1431_v25 }
 0x385   :  { %2193 = vmatmul.msk.bf16.vlgmr.msrb.gmra.mxu2 %vm1481_vm6, %v1606_v61 }
 0x38d   :  { %v1400_v27 = vpop.permute.xlu1 %1399 }
 0x38e   :  { %v1408_v32 = vsel %vm1403_vm5, %v1400_v27, %v1402_v2 }
 0x38f   :  { %v1418_v62 = vmax.f32 %v3270_v59, %v1408_v32  ;;  %v2321_v59 = vld [vmem:[%s3414_s7 + $0x20] sm:$0xff] }
 0x390   :  { %1803 = vmatpush.bf16.msrb.mxu1 %v2321_v59 }
 0x391   :  { %v1427_v44 = vadd.f32 %v3305_v11, %v1418_v62  ;;  %v2319_v11 = vld [vmem:[%s3414_s7 + $0x10] sm:$0xff] }
 0x393   :  { %v1432_v63 = vmax.f32 %v1427_v44, 0.0 }
 0x394   :  { %1804 = vmatpush.bf16.msrb.mxu1 %v2320_v9 }
 0x395   :  { %v1664_v13 = vpack.c.bf16 %v1432_v63, %v1432_v63 }
 0x397   :  { %2219 = vmatmul.msk.bf16.vlgmr.msra.gmra.mxu0 %vm1481_vm6, %v1664_v13 }
 0x398   :  { %1805 = vmatpush.bf16.msrb.mxu1 %v2319_v11 }
 0x39c   :  { %1806 = vmatpush.bf16.msrb.mxu1 %v2318_v0 }
 0x3a0   :  { %1807 = vmatpush.bf16.msrb.mxu1 %v2317_v15 }
 0x3d2   :  { %v1544_v40 = vpop.f32.mrf.mxu2 }
 0x3da   :  { %v1546_v10 = vpop.f32.mrf.mxu2 }
 0x3e2   :  { %v1498_v22 = vpop.f32.mrf.mxu0 }
 0x3e3   :  { %v1545_v29 = vadd.f32 %v1544_v40, %v1498_v22 }
 0x3ea   :  { %v1500_v26 = vpop.f32.mrf.mxu0 }
 0x3f2   :  { %v1601_v54 = vpop.f32.mrf.mxu0 }
 0x3f3   :  { %v1605_v6 = vadd.f32 %v1601_v54, %v1545_v29 }
 0x3fa   :  { %v1603_v18 = vpop.f32.mrf.mxu0 }
 0x408   :  { %v1659_v7 = vpop.f32.mrf.mxu2 }
 0x409   :  { %v1663_v36 = vadd.f32 %v1659_v7, %v1605_v6 }
 0x410   :  { %v1661_v30 = vpop.f32.mrf.mxu2 }
 0x414   :  { %v1717_v19 = vpop.f32.mrf.mxu0 }
 0x415   :  { %v1721_v4 = vadd.f32 %v1717_v19, %v1663_v36 }
 0x417   :  { %v1726_v33 = vadd.f32 %v2493_v3, %v1721_v4 }
 0x419   :  { %v1727_v35 = vmax.f32 %v1726_v33, 0.0 }
 0x41b   :  { %v1728_v8 = vpack.c.bf16 %v1727_v35, %v1727_v35 }
 0x41c   :  { %v1719_v37 = vpop.f32.mrf.mxu0 }
 0x41d   :  { %2248 = vmatmul.msk.bf16.vlgmr.msrb.gmra.mxu1 %vm156_vm15, %v1728_v8 }
 0x49a   :  { %v1809_v12 = vpop.f32.mrf.mxu1 }
 0x49b   :  { %v1810_v24 = vadd.f32 %v2494_v20, %v1809_v12 }
 0x49d   :  { %v1814_v42 = vsel %vm1813_vm8, %v1810_v24, -inf }
 0x49e   :  { %1815 = vmax.xlane.f32.xlu0 %v1814_v42 }
 0x4a2   :  { %v1811_v39 = vpop.f32.mrf.mxu1 }
 0x511   :  { %v1816_v58 = vpop.xlane.xlu0 %1815 }
 0x512   :  { %v1817_v43 = vsub.f32 %v1810_v24, %v1816_v58 }
 0x514   :  { %v1818_v45 = vmul.f32 1.442695, %v1817_v43 }
 0x516   :  { %2495 = vpow2.f32 %v1818_v45 }
 0x51c   :  { %v2496_v46 = vpop.eup %2495 }
 0x51d   :  { %v1820_v50 = vsel %vm1813_vm8, %v2496_v46, 0.0 }
 0x51e   :  { %1821 = vadd.xlane.f32.xlu1 %v1820_v50 }
 0x591   :  { %v1822_v47 = vpop.xlane.xlu1 %1821 }
 0x592   :  { %2497 = vlog2.f32 %v1822_v47 }
 0x598   :  { %v2498_v21 = vpop.eup %2497 }
 0x599   :  { %v1824_v14 = vmul.f32 0.6931472, %v2498_v21 }
 0x59b   :  { %v1825_v48 = vsub.f32 %v1817_v43, %v1824_v14 }
 0x59d   :  { %1826 = vst.msk [vmem:[%s3417_s9] sm:$0xff] %vm1813_vm8, %v1825_v48 }

</bundles_post_ra>
